<compile_context>
chip_gen: v7x
topology: tpu7x:2x2x1
jax: 0.10.0
libtpu: 0.0.40
codegen_flags: <defaults>
</compile_context>

<pallas_src>
import numpy as np
import jax
import jax.numpy as jnp
from jax.experimental import pallas as pl
from jax.experimental.pallas import tpu as pltpu

LANES = 128


# --------------------------------------------------------------------------
# The single fused kernel
# --------------------------------------------------------------------------
def _cnn_kernel(x1_ref, t1e_ref, t1o_ref, sh1_ref,
                t2e_ref, t2o_ref, sh2_ref,
                f1_ref, bf1_ref, f2_ref, bf2_ref, f3_ref, bf3_ref,
                out_ref,
                m1_ref, p1_ref, m2_ref, p2_ref):
    f32 = jnp.float32
    bf16 = jnp.bfloat16
    B = out_ref.shape[0]
    R1 = B * 32          # conv1 rows: (b, h),  h in [0,32)
    R2 = B * 16          # pooled1 / conv2 rows: (b, h2), h2 in [0,16)
    R3 = B * 8           # pooled2 rows: (b, h4), h4 in [0,8)

    # Zero the p1 tail rows once (read only by the shifted loads of never-consumed
    # conv2 output rows; zeroing keeps everything deterministic and finite).
    p1_ref[pl.ds(R2, 8), :] = jnp.zeros((8, LANES), f32)

    # ---------------- layer1: Conv(3->6,k=5) as 5 vertical taps x (even/odd cols) ----------------
    # x1 rows = b*32 + h, lanes = w*4 + c.  Output lanes = w2*8 + o (w2 = w//2).
    ye = jnp.zeros((R1, LANES), f32)
    yo = jnp.zeros((R1, LANES), f32)
    for i in range(5):
        xs = x1_ref[pl.ds(i, R1), :].astype(bf16)                       # rows shifted by i
        ye = ye + jnp.dot(xs, t1e_ref[i], preferred_element_type=f32)   # even output columns
        yo = yo + jnp.dot(xs, t1o_ref[i], preferred_element_type=f32)   # odd  output columns
    sh1 = sh1_ref[...]                                                  # folded BN shift (+bias)
    # shift + ReLU + W-direction 2x2 max, written once to VMEM
    m1_ref[...] = jnp.maximum(jnp.maximum(ye + sh1, 0.0),
                              jnp.maximum(yo + sh1, 0.0))
    # H-direction 2x2 max via stride-2 row reads -> pooled1 (rows b*16+h2, lanes w2*8+c)
    p1_ref[pl.ds(0, R2), :] = jnp.maximum(m1_ref[pl.ds(0, R2, stride=2), :],
                                          m1_ref[pl.ds(1, R2, stride=2), :])

    # ---------------- layer2: Conv(6->16,k=5), same scheme ----------------
    ye2 = jnp.zeros((R2, LANES), f32)
    yo2 = jnp.zeros((R2, LANES), f32)
    for i in range(5):
        ps = p1_ref[pl.ds(i, R2), :].astype(bf16)
        ye2 = ye2 + jnp.dot(ps, t2e_ref[i], preferred_element_type=f32)
        yo2 = yo2 + jnp.dot(ps, t2o_ref[i], preferred_element_type=f32)
    sh2 = sh2_ref[...]
    m2_ref[...] = jnp.maximum(jnp.maximum(ye2 + sh2, 0.0),
                              jnp.maximum(yo2 + sh2, 0.0))
    # pooled2: rows b*8 + h4, lanes w4*16 + o2
    p2_ref[...] = jnp.maximum(m2_ref[pl.ds(0, R3, stride=2), :],
                              m2_ref[pl.ds(1, R3, stride=2), :])

    # ---------------- fc1: Linear(16*5*5 -> 120) ----------------
    # PyTorch flatten order (o2*25 + h4*5 + w4) is folded into f1; per-h4 batch rows are
    # gathered with a stride-8 sublane read (rows b*8 + h4).
    h = jnp.zeros((B, LANES), f32)
    for h4 in range(5):
        lhs = p2_ref[pl.ds(h4, B, stride=8), :].astype(bf16)            # (B, 128)
        h = h + jnp.dot(lhs, f1_ref[h4], preferred_element_type=f32)
    h = jnp.maximum(h + bf1_ref[...], 0.0)

    # ---------------- fc2 / fc3 ----------------
    h = jnp.dot(h.astype(bf16), f2_ref[...], preferred_element_type=f32) + bf2_ref[...]
    h = jnp.maximum(h, 0.0)
    h = jnp.dot(h.astype(bf16), f3_ref[...], preferred_element_type=f32) + bf3_ref[...]
    out_ref[...] = h[:, 0:out_ref.shape[1]]


# --------------------------------------------------------------------------
# One-time parameter repacking (outside the hot path)
# --------------------------------------------------------------------------
def prepare_params(params, eps=1e-5):
    """Fold BN scale (+conv bias) into Toeplitz conv weights; repack fc weights."""
    def fold(conv_b, gamma, beta, mean, var):
        inv = 1.0 / np.sqrt(np.asarray(var) + eps)
        scale = np.asarray(gamma) * inv
        shift = (np.asarray(conv_b) - np.asarray(mean)) * scale + np.asarray(beta)
        return scale, shift

    s1, t1 = fold(params["b1"], params["g1"], params["be1"], params["m1"], params["v1"])
    s2, t2 = fold(params["b2"], params["g2"], params["be2"], params["m2"], params["v2"])
    w1s = np.asarray(params["w1"]) * s1[:, None, None, None]       # (6,3,5,5)  scale folded in
    w2s = np.asarray(params["w2"]) * s2[:, None, None, None]       # (16,6,5,5)

    # Conv1 Toeplitz blocks: T1[p][i][w'*4+c, w2*8+o] = w1s[o,c,i, w' - (2*w2+p)]
    T1 = np.zeros((2, 5, LANES, LANES), np.float32)
    for p in range(2):
        for i in range(5):
            for w2 in range(16):
                for j in range(5):
                    wp = 2 * w2 + p + j
                    if wp >= 32:
                        continue
                    T1[p, i, wp * 4:wp * 4 + 3, w2 * 8:w2 * 8 + 6] = w1s[:, :, i, j].T  # (c,o)

    # Conv2 Toeplitz blocks: T2[p][i][w'*8+c2, w4*16+o2] = w2s[o2,c2,i, w' - (2*w4+p)]
    T2 = np.zeros((2, 5, LANES, LANES), np.float32)
    for p in range(2):
        for i in range(5):
            for w4 in range(8):
                for j in range(5):
                    wp = 2 * w4 + p + j
                    if wp >= 16:
                        continue
                    T2[p, i, wp * 8:wp * 8 + 6, w4 * 16:w4 * 16 + 16] = w2s[:, :, i, j].T  # (c2,o2)

    # BN shift vectors broadcast to the output lane patterns.
    sh1 = np.zeros((1, LANES), np.float32)
    for w2 in range(16):
        sh1[0, w2 * 8:w2 * 8 + 6] = t1
    sh2 = np.tile(t2.astype(np.float32), 8).reshape(1, LANES)

    # fc1: F1[h4][w4*16+o2, n] = Wf1[n, o2*25 + h4*5 + w4]
    wf1 = np.asarray(params["fw1"])                                 # (120, 400)
    F1 = np.zeros((5, LANES, LANES), np.float32)
    for h4 in range(5):
        for w4 in range(5):
            for o2 in range(16):
                F1[h4, w4 * 16 + o2, :120] = wf1[:, o2 * 25 + h4 * 5 + w4]

    F2 = np.zeros((LANES, LANES), np.float32)
    F2[:120, :84] = np.asarray(params["fw2"]).T
    F3 = np.zeros((LANES, LANES), np.float32)
    F3[:84, :10] = np.asarray(params["fw3"]).T

    def padvec(v):
        v = np.asarray(v, np.float32)
        out = np.zeros((1, LANES), np.float32)
        out[0, :v.shape[0]] = v
        return out

    return {
        "t1e": jnp.asarray(T1[0], jnp.bfloat16), "t1o": jnp.asarray(T1[1], jnp.bfloat16),
        "sh1": jnp.asarray(sh1),
        "t2e": jnp.asarray(T2[0], jnp.bfloat16), "t2o": jnp.asarray(T2[1], jnp.bfloat16),
        "sh2": jnp.asarray(sh2),
        "f1": jnp.asarray(F1, jnp.bfloat16), "bf1": jnp.asarray(padvec(params["fb1"])),
        "f2": jnp.asarray(F2, jnp.bfloat16), "bf2": jnp.asarray(padvec(params["fb2"])),
        "f3": jnp.asarray(F3, jnp.bfloat16), "bf3": jnp.asarray(padvec(params["fb3"])),
    }


# --------------------------------------------------------------------------
# Forward pass: one pallas_call
# --------------------------------------------------------------------------
@jax.jit
def cnn_forward(prepped, x):
    B = x.shape[0]
    # NCHW -> rows = b*32 + h, lanes = w*4 + c (c padded 3->4), plus 8 zero tail rows
    # for the shifted (h+i) reads.  Pure layout plumbing, done by XLA on a 12 KB tensor.
    xr = jnp.transpose(x, (0, 2, 3, 1))                       # (B,32,32,3)
    xr = jnp.pad(xr, ((0, 0), (0, 0), (0, 0), (0, 1)))        # (B,32,32,4)
    xr = xr.reshape(B * 32, LANES)
    xr = jnp.pad(xr, ((0, 8), (0, 0))).astype(jnp.float32)    # (B*32+8, 128)

    R1, R2, R3 = B * 32, B * 16, B * 8
    return pl.pallas_call(
        _cnn_kernel,
        out_shape=jax.ShapeDtypeStruct((B, 10), jnp.float32),
        in_specs=[pl.BlockSpec(memory_space=pltpu.MemorySpace.VMEM)] * 13,
        out_specs=pl.BlockSpec(memory_space=pltpu.MemorySpace.VMEM),
        scratch_shapes=[
            pltpu.VMEM((R1, LANES), jnp.float32),       # m1: W-pooled conv1 (pre H-pool)
            pltpu.VMEM((R2 + 8, LANES), jnp.float32),   # p1: pooled conv1 / conv2 input (+tail)
            pltpu.VMEM((R2, LANES), jnp.float32),       # m2: W-pooled conv2 (pre H-pool)
            pltpu.VMEM((R3, LANES), jnp.float32),       # p2: pooled conv2 / fc input
        ],
    )(xr,
      prepped["t1e"], prepped["t1o"], prepped["sh1"],
      prepped["t2e"], prepped["t2o"], prepped["sh2"],
      prepped["f1"], prepped["bf1"],
      prepped["f2"], prepped["bf2"],
      prepped["f3"], prepped["bf3"])


# --------------------------------------------------------------------------
# Deterministic parameters / example input
# --------------------------------------------------------------------------
def init_params(key):
    ks = jax.random.split(key, 16)
    f32 = jnp.float32
    return {
        # conv1 + bn1
        "w1": 0.1 * jax.random.normal(ks[0], (6, 3, 5, 5), f32),
        "b1": 0.05 * jax.random.normal(ks[1], (6,), f32),
        "g1": 1.0 + 0.05 * jax.random.normal(ks[2], (6,), f32),
        "be1": 0.05 * jax.random.normal(ks[3], (6,), f32),
        "m1": 0.05 * jax.random.normal(ks[4], (6,), f32),
        "v1": 1.0 + 0.1 * jnp.abs(jax.random.normal(ks[5], (6,), f32)),
        # conv2 + bn2
        "w2": 0.1 * jax.random.normal(ks[6], (16, 6, 5, 5), f32),
        "b2": 0.05 * jax.random.normal(ks[7], (16,), f32),
        "g2": 1.0 + 0.05 * jax.random.normal(ks[8], (16,), f32),
        "be2": 0.05 * jax.random.normal(ks[9], (16,), f32),
        "m2": 0.05 * jax.random.normal(ks[10], (16,), f32),
        "v2": 1.0 + 0.1 * jnp.abs(jax.random.normal(ks[11], (16,), f32)),
        # fully connected stack
        "fw1": 0.05 * jax.random.normal(ks[12], (120, 400), f32),
        "fb1": jnp.zeros((120,), f32),
        "fw2": 0.05 * jax.random.normal(ks[13], (84, 120), f32),
        "fb2": jnp.zeros((84,), f32),
        "fw3": 0.05 * jax.random.normal(ks[14], (10, 84), f32),
        "fb3": jnp.zeros((10,), f32),
    }


if __name__ == "__main__":
    key = jax.random.PRNGKey(0)
    pkey, xkey = jax.random.split(key)
    params = init_params(pkey)
    prepped = prepare_params(params)          # one-time weight repack (not in hot path)
    # CIFAR-10 style input (batch=2, NCHW); 32x32 is required by the 16*5*5 flatten.
    x = jax.random.normal(xkey, (2, 3, 32, 32), dtype=jnp.float32)
    out = jax.block_until_ready(cnn_forward(prepped, x))
    assert out.shape == (2, 10), out.shape
    assert bool(jnp.all(jnp.isfinite(out)))
    print("KERNEL_OK")
</pallas_src>

<mosaic_0001>
module attributes {stable_mosaic.version = 11 : i64} {
  func.func @_cnn_kernel(%arg0: memref<72x128xf32, #tpu.memory_space<vmem>>, %arg1: memref<5x128x128xbf16, #tpu.memory_space<vmem>>, %arg2: memref<5x128x128xbf16, #tpu.memory_space<vmem>>, %arg3: memref<1x128xf32, #tpu.memory_space<vmem>>, %arg4: memref<5x128x128xbf16, #tpu.memory_space<vmem>>, %arg5: memref<5x128x128xbf16, #tpu.memory_space<vmem>>, %arg6: memref<1x128xf32, #tpu.memory_space<vmem>>, %arg7: memref<5x128x128xbf16, #tpu.memory_space<vmem>>, %arg8: memref<1x128xf32, #tpu.memory_space<vmem>>, %arg9: memref<128x128xbf16, #tpu.memory_space<vmem>>, %arg10: memref<1x128xf32, #tpu.memory_space<vmem>>, %arg11: memref<128x128xbf16, #tpu.memory_space<vmem>>, %arg12: memref<1x128xf32, #tpu.memory_space<vmem>>, %arg13: memref<2x10xf32, #tpu.memory_space<vmem>>, %arg14: memref<64x128xf32, #tpu.memory_space<vmem>>, %arg15: memref<40x128xf32, #tpu.memory_space<vmem>>, %arg16: memref<32x128xf32, #tpu.memory_space<vmem>>, %arg17: memref<16x128xf32, #tpu.memory_space<vmem>>) attributes {dimension_semantics = [], scalar_prefetch = 0 : i64, scratch_operands = 4 : i64, tpu.core_type = #tpu.core_type<tc>} {
    %cst = arith.constant 0.000000e+00 : f32
    %0 = vector.broadcast %cst : f32 to vector<8x128xf32>
    %c32 = arith.constant 32 : index
    %c0 = arith.constant 0 : index
    %1 = vector.load %arg15[%c32, %c0] : memref<40x128xf32, #tpu.memory_space<vmem>>, vector<8x128xf32>
    tpu.vector_store %arg15[%c32, %c0], %0 {strides = array<i32>} : memref<40x128xf32, #tpu.memory_space<vmem>>, vector<8x128xf32>,
    %cst_0 = arith.constant 0.000000e+00 : f32
    %2 = vector.broadcast %cst_0 : f32 to vector<64x128xf32>
    %cst_1 = arith.constant 0.000000e+00 : f32
    %3 = vector.broadcast %cst_1 : f32 to vector<64x128xf32>
    %c0_2 = arith.constant 0 : index
    %c0_3 = arith.constant 0 : index
    %4 = vector.load %arg0[%c0_2, %c0_3] : memref<72x128xf32, #tpu.memory_space<vmem>>, vector<64x128xf32>
    %5 = arith.truncf %4 : vector<64x128xf32> to vector<64x128xbf16>
    %c0_4 = arith.constant 0 : index
    %c0_5 = arith.constant 0 : index
    %c0_6 = arith.constant 0 : index
    %6 = vector.load %arg1[%c0_4, %c0_5, %c0_6] : memref<5x128x128xbf16, #tpu.memory_space<vmem>>, vector<1x128x128xbf16>
    %7 = vector.shape_cast %6 : vector<1x128x128xbf16> to vector<128x128xbf16>
    %cst_7 = arith.constant dense<0.000000e+00> : vector<64x128xf32>
    %8 = tpu.matmul %5, %7, %cst_7 {dimension_numbers = #tpu.dot_dimension_numbers<[1], [0], [0], [1], [0, 0, 1, 1], [], []>} : vector<64x128xbf16>, vector<128x128xbf16>, vector<64x128xf32> -> vector<64x128xf32>
    %9 = arith.addf %2, %8 : vector<64x128xf32>
    %c0_8 = arith.constant 0 : index
    %c0_9 = arith.constant 0 : index
    %c0_10 = arith.constant 0 : index
    %10 = vector.load %arg2[%c0_8, %c0_9, %c0_10] : memref<5x128x128xbf16, #tpu.memory_space<vmem>>, vector<1x128x128xbf16>
    %11 = vector.shape_cast %10 : vector<1x128x128xbf16> to vector<128x128xbf16>
    %cst_11 = arith.constant dense<0.000000e+00> : vector<64x128xf32>
    %12 = tpu.matmul %5, %11, %cst_11 {dimension_numbers = #tpu.dot_dimension_numbers<[1], [0], [0], [1], [0, 0, 1, 1], [], []>} : vector<64x128xbf16>, vector<128x128xbf16>, vector<64x128xf32> -> vector<64x128xf32>
    %13 = arith.addf %3, %12 : vector<64x128xf32>
    %c1 = arith.constant 1 : index
    %c0_12 = arith.constant 0 : index
    %14 = vector.load %arg0[%c1, %c0_12] : memref<72x128xf32, #tpu.memory_space<vmem>>, vector<64x128xf32>
    %15 = arith.truncf %14 : vector<64x128xf32> to vector<64x128xbf16>
    %c1_13 = arith.constant 1 : index
    %c0_14 = arith.constant 0 : index
    %c0_15 = arith.constant 0 : index
    %16 = vector.load %arg1[%c1_13, %c0_14, %c0_15] : memref<5x128x128xbf16, #tpu.memory_space<vmem>>, vector<1x128x128xbf16>
    %17 = vector.shape_cast %16 : vector<1x128x128xbf16> to vector<128x128xbf16>
    %cst_16 = arith.constant dense<0.000000e+00> : vector<64x128xf32>
    %18 = tpu.matmul %15, %17, %cst_16 {dimension_numbers = #tpu.dot_dimension_numbers<[1], [0], [0], [1], [0, 0, 1, 1], [], []>} : vector<64x128xbf16>, vector<128x128xbf16>, vector<64x128xf32> -> vector<64x128xf32>
    %19 = arith.addf %9, %18 : vector<64x128xf32>
    %c1_17 = arith.constant 1 : index
    %c0_18 = arith.constant 0 : index
    %c0_19 = arith.constant 0 : index
    %20 = vector.load %arg2[%c1_17, %c0_18, %c0_19] : memref<5x128x128xbf16, #tpu.memory_space<vmem>>, vector<1x128x128xbf16>
    %21 = vector.shape_cast %20 : vector<1x128x128xbf16> to vector<128x128xbf16>
    %cst_20 = arith.constant dense<0.000000e+00> : vector<64x128xf32>
    %22 = tpu.matmul %15, %21, %cst_20 {dimension_numbers = #tpu.dot_dimension_numbers<[1], [0], [0], [1], [0, 0, 1, 1], [], []>} : vector<64x128xbf16>, vector<128x128xbf16>, vector<64x128xf32> -> vector<64x128xf32>
    %23 = arith.addf %13, %22 : vector<64x128xf32>
    %c2 = arith.constant 2 : index
    %c0_21 = arith.constant 0 : index
    %24 = vector.load %arg0[%c2, %c0_21] : memref<72x128xf32, #tpu.memory_space<vmem>>, vector<64x128xf32>
    %25 = arith.truncf %24 : vector<64x128xf32> to vector<64x128xbf16>
    %c2_22 = arith.constant 2 : index
    %c0_23 = arith.constant 0 : index
    %c0_24 = arith.constant 0 : index
    %26 = vector.load %arg1[%c2_22, %c0_23, %c0_24] : memref<5x128x128xbf16, #tpu.memory_space<vmem>>, vector<1x128x128xbf16>
    %27 = vector.shape_cast %26 : vector<1x128x128xbf16> to vector<128x128xbf16>
    %cst_25 = arith.constant dense<0.000000e+00> : vector<64x128xf32>
    %28 = tpu.matmul %25, %27, %cst_25 {dimension_numbers = #tpu.dot_dimension_numbers<[1], [0], [0], [1], [0, 0, 1, 1], [], []>} : vector<64x128xbf16>, vector<128x128xbf16>, vector<64x128xf32> -> vector<64x128xf32>
    %29 = arith.addf %19, %28 : vector<64x128xf32>
    %c2_26 = arith.constant 2 : index
    %c0_27 = arith.constant 0 : index
    %c0_28 = arith.constant 0 : index
    %30 = vector.load %arg2[%c2_26, %c0_27, %c0_28] : memref<5x128x128xbf16, #tpu.memory_space<vmem>>, vector<1x128x128xbf16>
    %31 = vector.shape_cast %30 : vector<1x128x128xbf16> to vector<128x128xbf16>
    %cst_29 = arith.constant dense<0.000000e+00> : vector<64x128xf32>
    %32 = tpu.matmul %25, %31, %cst_29 {dimension_numbers = #tpu.dot_dimension_numbers<[1], [0], [0], [1], [0, 0, 1, 1], [], []>} : vector<64x128xbf16>, vector<128x128xbf16>, vector<64x128xf32> -> vector<64x128xf32>
    %33 = arith.addf %23, %32 : vector<64x128xf32>
    %c3 = arith.constant 3 : index
    %c0_30 = arith.constant 0 : index
    %34 = vector.load %arg0[%c3, %c0_30] : memref<72x128xf32, #tpu.memory_space<vmem>>, vector<64x128xf32>
    %35 = arith.truncf %34 : vector<64x128xf32> to vector<64x128xbf16>
    %c3_31 = arith.constant 3 : index
    %c0_32 = arith.constant 0 : index
    %c0_33 = arith.constant 0 : index
    %36 = vector.load %arg1[%c3_31, %c0_32, %c0_33] : memref<5x128x128xbf16, #tpu.memory_space<vmem>>, vector<1x128x128xbf16>
    %37 = vector.shape_cast %36 : vector<1x128x128xbf16> to vector<128x128xbf16>
    %cst_34 = arith.constant dense<0.000000e+00> : vector<64x128xf32>
    %38 = tpu.matmul %35, %37, %cst_34 {dimension_numbers = #tpu.dot_dimension_numbers<[1], [0], [0], [1], [0, 0, 1, 1], [], []>} : vector<64x128xbf16>, vector<128x128xbf16>, vector<64x128xf32> -> vector<64x128xf32>
    %39 = arith.addf %29, %38 : vector<64x128xf32>
    %c3_35 = arith.constant 3 : index
    %c0_36 = arith.constant 0 : index
    %c0_37 = arith.constant 0 : index
    %40 = vector.load %arg2[%c3_35, %c0_36, %c0_37] : memref<5x128x128xbf16, #tpu.memory_space<vmem>>, vector<1x128x128xbf16>
    %41 = vector.shape_cast %40 : vector<1x128x128xbf16> to vector<128x128xbf16>
    %cst_38 = arith.constant dense<0.000000e+00> : vector<64x128xf32>
    %42 = tpu.matmul %35, %41, %cst_38 {dimension_numbers = #tpu.dot_dimension_numbers<[1], [0], [0], [1], [0, 0, 1, 1], [], []>} : vector<64x128xbf16>, vector<128x128xbf16>, vector<64x128xf32> -> vector<64x128xf32>
    %43 = arith.addf %33, %42 : vector<64x128xf32>
    %c4 = arith.constant 4 : index
    %c0_39 = arith.constant 0 : index
    %44 = vector.load %arg0[%c4, %c0_39] : memref<72x128xf32, #tpu.memory_space<vmem>>, vector<64x128xf32>
    %45 = arith.truncf %44 : vector<64x128xf32> to vector<64x128xbf16>
    %c4_40 = arith.constant 4 : index
    %c0_41 = arith.constant 0 : index
    %c0_42 = arith.constant 0 : index
    %46 = vector.load %arg1[%c4_40, %c0_41, %c0_42] : memref<5x128x128xbf16, #tpu.memory_space<vmem>>, vector<1x128x128xbf16>
    %47 = vector.shape_cast %46 : vector<1x128x128xbf16> to vector<128x128xbf16>
    %cst_43 = arith.constant dense<0.000000e+00> : vector<64x128xf32>
    %48 = tpu.matmul %45, %47, %cst_43 {dimension_numbers = #tpu.dot_dimension_numbers<[1], [0], [0], [1], [0, 0, 1, 1], [], []>} : vector<64x128xbf16>, vector<128x128xbf16>, vector<64x128xf32> -> vector<64x128xf32>
    %49 = arith.addf %39, %48 : vector<64x128xf32>
    %c4_44 = arith.constant 4 : index
    %c0_45 = arith.constant 0 : index
    %c0_46 = arith.constant 0 : index
    %50 = vector.load %arg2[%c4_44, %c0_45, %c0_46] : memref<5x128x128xbf16, #tpu.memory_space<vmem>>, vector<1x128x128xbf16>
    %51 = vector.shape_cast %50 : vector<1x128x128xbf16> to vector<128x128xbf16>
    %cst_47 = arith.constant dense<0.000000e+00> : vector<64x128xf32>
    %52 = tpu.matmul %45, %51, %cst_47 {dimension_numbers = #tpu.dot_dimension_numbers<[1], [0], [0], [1], [0, 0, 1, 1], [], []>} : vector<64x128xbf16>, vector<128x128xbf16>, vector<64x128xf32> -> vector<64x128xf32>
    %53 = arith.addf %43, %52 : vector<64x128xf32>
    %c0_48 = arith.constant 0 : index
    %c0_49 = arith.constant 0 : index
    %54 = vector.load %arg3[%c0_48, %c0_49] : memref<1x128xf32, #tpu.memory_space<vmem>>, vector<1x128xf32>
    %55 = vector.broadcast %54 : vector<1x128xf32> to vector<64x128xf32>
    %56 = arith.addf %49, %55 : vector<64x128xf32>
    %cst_50 = arith.constant 0.000000e+00 : f32
    %57 = vector.broadcast %cst_50 : f32 to vector<64x128xf32>
    %58 = arith.maximumf %56, %57 : vector<64x128xf32>
    %59 = vector.broadcast %54 : vector<1x128xf32> to vector<64x128xf32>
    %60 = arith.addf %53, %59 : vector<64x128xf32>
    %cst_51 = arith.constant 0.000000e+00 : f32
    %61 = vector.broadcast %cst_51 : f32 to vector<64x128xf32>
    %62 = arith.maximumf %60, %61 : vector<64x128xf32>
    %63 = arith.maximumf %58, %62 : vector<64x128xf32>
    %c0_52 = arith.constant 0 : index
    %c0_53 = arith.constant 0 : index
    %64 = vector.load %arg14[%c0_52, %c0_53] : memref<64x128xf32, #tpu.memory_space<vmem>>, vector<64x128xf32>
    tpu.vector_store %arg14[%c0_52, %c0_53], %63 {strides = array<i32>} : memref<64x128xf32, #tpu.memory_space<vmem>>, vector<64x128xf32>,
    %c0_54 = arith.constant 0 : index
    %c0_55 = arith.constant 0 : index
    %65 = tpu.strided_load %arg14[%c0_54, %c0_55] {strides = array<i32: 2, 1>} : memref<64x128xf32, #tpu.memory_space<vmem>>, vector<32x128xf32>
    %c1_56 = arith.constant 1 : index
    %c0_57 = arith.constant 0 : index
    %66 = tpu.strided_load %arg14[%c1_56, %c0_57] {strides = array<i32: 2, 1>} : memref<64x128xf32, #tpu.memory_space<vmem>>, vector<32x128xf32>
    %67 = arith.maximumf %65, %66 : vector<32x128xf32>
    %c0_58 = arith.constant 0 : index
    %c0_59 = arith.constant 0 : index
    %68 = vector.load %arg15[%c0_58, %c0_59] : memref<40x128xf32, #tpu.memory_space<vmem>>, vector<32x128xf32>
    tpu.vector_store %arg15[%c0_58, %c0_59], %67 {strides = array<i32>} : memref<40x128xf32, #tpu.memory_space<vmem>>, vector<32x128xf32>,
    %cst_60 = arith.constant 0.000000e+00 : f32
    %69 = vector.broadcast %cst_60 : f32 to vector<32x128xf32>
    %cst_61 = arith.constant 0.000000e+00 : f32
    %70 = vector.broadcast %cst_61 : f32 to vector<32x128xf32>
    %c0_62 = arith.constant 0 : index
    %c0_63 = arith.constant 0 : index
    %71 = vector.load %arg15[%c0_62, %c0_63] : memref<40x128xf32, #tpu.memory_space<vmem>>, vector<32x128xf32>
    %72 = arith.truncf %71 : vector<32x128xf32> to vector<32x128xbf16>
    %c0_64 = arith.constant 0 : index
    %c0_65 = arith.constant 0 : index
    %c0_66 = arith.constant 0 : index
    %73 = vector.load %arg4[%c0_64, %c0_65, %c0_66] : memref<5x128x128xbf16, #tpu.memory_space<vmem>>, vector<1x128x128xbf16>
    %74 = vector.shape_cast %73 : vector<1x128x128xbf16> to vector<128x128xbf16>
    %cst_67 = arith.constant dense<0.000000e+00> : vector<32x128xf32>
    %75 = tpu.matmul %72, %74, %cst_67 {dimension_numbers = #tpu.dot_dimension_numbers<[1], [0], [0], [1], [0, 0, 1, 1], [], []>} : vector<32x128xbf16>, vector<128x128xbf16>, vector<32x128xf32> -> vector<32x128xf32>
    %76 = arith.addf %69, %75 : vector<32x128xf32>
    %c0_68 = arith.constant 0 : index
    %c0_69 = arith.constant 0 : index
    %c0_70 = arith.constant 0 : index
    %77 = vector.load %arg5[%c0_68, %c0_69, %c0_70] : memref<5x128x128xbf16, #tpu.memory_space<vmem>>, vector<1x128x128xbf16>
    %78 = vector.shape_cast %77 : vector<1x128x128xbf16> to vector<128x128xbf16>
    %cst_71 = arith.constant dense<0.000000e+00> : vector<32x128xf32>
    %79 = tpu.matmul %72, %78, %cst_71 {dimension_numbers = #tpu.dot_dimension_numbers<[1], [0], [0], [1], [0, 0, 1, 1], [], []>} : vector<32x128xbf16>, vector<128x128xbf16>, vector<32x128xf32> -> vector<32x128xf32>
    %80 = arith.addf %70, %79 : vector<32x128xf32>
    %c1_72 = arith.constant 1 : index
    %c0_73 = arith.constant 0 : index
    %81 = vector.load %arg15[%c1_72, %c0_73] : memref<40x128xf32, #tpu.memory_space<vmem>>, vector<32x128xf32>
    %82 = arith.truncf %81 : vector<32x128xf32> to vector<32x128xbf16>
    %c1_74 = arith.constant 1 : index
    %c0_75 = arith.constant 0 : index
    %c0_76 = arith.constant 0 : index
    %83 = vector.load %arg4[%c1_74, %c0_75, %c0_76] : memref<5x128x128xbf16, #tpu.memory_space<vmem>>, vector<1x128x128xbf16>
    %84 = vector.shape_cast %83 : vector<1x128x128xbf16> to vector<128x128xbf16>
    %cst_77 = arith.constant dense<0.000000e+00> : vector<32x128xf32>
    %85 = tpu.matmul %82, %84, %cst_77 {dimension_numbers = #tpu.dot_dimension_numbers<[1], [0], [0], [1], [0, 0, 1, 1], [], []>} : vector<32x128xbf16>, vector<128x128xbf16>, vector<32x128xf32> -> vector<32x128xf32>
    %86 = arith.addf %76, %85 : vector<32x128xf32>
    %c1_78 = arith.constant 1 : index
    %c0_79 = arith.constant 0 : index
    %c0_80 = arith.constant 0 : index
    %87 = vector.load %arg5[%c1_78, %c0_79, %c0_80] : memref<5x128x128xbf16, #tpu.memory_space<vmem>>, vector<1x128x128xbf16>
    %88 = vector.shape_cast %87 : vector<1x128x128xbf16> to vector<128x128xbf16>
    %cst_81 = arith.constant dense<0.000000e+00> : vector<32x128xf32>
    %89 = tpu.matmul %82, %88, %cst_81 {dimension_numbers = #tpu.dot_dimension_numbers<[1], [0], [0], [1], [0, 0, 1, 1], [], []>} : vector<32x128xbf16>, vector<128x128xbf16>, vector<32x128xf32> -> vector<32x128xf32>
    %90 = arith.addf %80, %89 : vector<32x128xf32>
    %c2_82 = arith.constant 2 : index
    %c0_83 = arith.constant 0 : index
    %91 = vector.load %arg15[%c2_82, %c0_83] : memref<40x128xf32, #tpu.memory_space<vmem>>, vector<32x128xf32>
    %92 = arith.truncf %91 : vector<32x128xf32> to vector<32x128xbf16>
    %c2_84 = arith.constant 2 : index
    %c0_85 = arith.constant 0 : index
    %c0_86 = arith.constant 0 : index
    %93 = vector.load %arg4[%c2_84, %c0_85, %c0_86] : memref<5x128x128xbf16, #tpu.memory_space<vmem>>, vector<1x128x128xbf16>
    %94 = vector.shape_cast %93 : vector<1x128x128xbf16> to vector<128x128xbf16>
    %cst_87 = arith.constant dense<0.000000e+00> : vector<32x128xf32>
    %95 = tpu.matmul %92, %94, %cst_87 {dimension_numbers = #tpu.dot_dimension_numbers<[1], [0], [0], [1], [0, 0, 1, 1], [], []>} : vector<32x128xbf16>, vector<128x128xbf16>, vector<32x128xf32> -> vector<32x128xf32>
    %96 = arith.addf %86, %95 : vector<32x128xf32>
    %c2_88 = arith.constant 2 : index
    %c0_89 = arith.constant 0 : index
    %c0_90 = arith.constant 0 : index
    %97 = vector.load %arg5[%c2_88, %c0_89, %c0_90] : memref<5x128x128xbf16, #tpu.memory_space<vmem>>, vector<1x128x128xbf16>
    %98 = vector.shape_cast %97 : vector<1x128x128xbf16> to vector<128x128xbf16>
    %cst_91 = arith.constant dense<0.000000e+00> : vector<32x128xf32>
    %99 = tpu.matmul %92, %98, %cst_91 {dimension_numbers = #tpu.dot_dimension_numbers<[1], [0], [0], [1], [0, 0, 1, 1], [], []>} : vector<32x128xbf16>, vector<128x128xbf16>, vector<32x128xf32> -> vector<32x128xf32>
    %100 = arith.addf %90, %99 : vector<32x128xf32>
    %c3_92 = arith.constant 3 : index
    %c0_93 = arith.constant 0 : index
    %101 = vector.load %arg15[%c3_92, %c0_93] : memref<40x128xf32, #tpu.memory_space<vmem>>, vector<32x128xf32>
    %102 = arith.truncf %101 : vector<32x128xf32> to vector<32x128xbf16>
    %c3_94 = arith.constant 3 : index
    %c0_95 = arith.constant 0 : index
    %c0_96 = arith.constant 0 : index
    %103 = vector.load %arg4[%c3_94, %c0_95, %c0_96] : memref<5x128x128xbf16, #tpu.memory_space<vmem>>, vector<1x128x128xbf16>
    %104 = vector.shape_cast %103 : vector<1x128x128xbf16> to vector<128x128xbf16>
    %cst_97 = arith.constant dense<0.000000e+00> : vector<32x128xf32>
    %105 = tpu.matmul %102, %104, %cst_97 {dimension_numbers = #tpu.dot_dimension_numbers<[1], [0], [0], [1], [0, 0, 1, 1], [], []>} : vector<32x128xbf16>, vector<128x128xbf16>, vector<32x128xf32> -> vector<32x128xf32>
    %106 = arith.addf %96, %105 : vector<32x128xf32>
    %c3_98 = arith.constant 3 : index
    %c0_99 = arith.constant 0 : index
    %c0_100 = arith.constant 0 : index
    %107 = vector.load %arg5[%c3_98, %c0_99, %c0_100] : memref<5x128x128xbf16, #tpu.memory_space<vmem>>, vector<1x128x128xbf16>
    %108 = vector.shape_cast %107 : vector<1x128x128xbf16> to vector<128x128xbf16>
    %cst_101 = arith.constant dense<0.000000e+00> : vector<32x128xf32>
    %109 = tpu.matmul %102, %108, %cst_101 {dimension_numbers = #tpu.dot_dimension_numbers<[1], [0], [0], [1], [0, 0, 1, 1], [], []>} : vector<32x128xbf16>, vector<128x128xbf16>, vector<32x128xf32> -> vector<32x128xf32>
    %110 = arith.addf %100, %109 : vector<32x128xf32>
    %c4_102 = arith.constant 4 : index
    %c0_103 = arith.constant 0 : index
    %111 = vector.load %arg15[%c4_102, %c0_103] : memref<40x128xf32, #tpu.memory_space<vmem>>, vector<32x128xf32>
    %112 = arith.truncf %111 : vector<32x128xf32> to vector<32x128xbf16>
    %c4_104 = arith.constant 4 : index
    %c0_105 = arith.constant 0 : index
    %c0_106 = arith.constant 0 : index
    %113 = vector.load %arg4[%c4_104, %c0_105, %c0_106] : memref<5x128x128xbf16, #tpu.memory_space<vmem>>, vector<1x128x128xbf16>
    %114 = vector.shape_cast %113 : vector<1x128x128xbf16> to vector<128x128xbf16>
    %cst_107 = arith.constant dense<0.000000e+00> : vector<32x128xf32>
    %115 = tpu.matmul %112, %114, %cst_107 {dimension_numbers = #tpu.dot_dimension_numbers<[1], [0], [0], [1], [0, 0, 1, 1], [], []>} : vector<32x128xbf16>, vector<128x128xbf16>, vector<32x128xf32> -> vector<32x128xf32>
    %116 = arith.addf %106, %115 : vector<32x128xf32>
    %c4_108 = arith.constant 4 : index
    %c0_109 = arith.constant 0 : index
    %c0_110 = arith.constant 0 : index
    %117 = vector.load %arg5[%c4_108, %c0_109, %c0_110] : memref<5x128x128xbf16, #tpu.memory_space<vmem>>, vector<1x128x128xbf16>
    %118 = vector.shape_cast %117 : vector<1x128x128xbf16> to vector<128x128xbf16>
    %cst_111 = arith.constant dense<0.000000e+00> : vector<32x128xf32>
    %119 = tpu.matmul %112, %118, %cst_111 {dimension_numbers = #tpu.dot_dimension_numbers<[1], [0], [0], [1], [0, 0, 1, 1], [], []>} : vector<32x128xbf16>, vector<128x128xbf16>, vector<32x128xf32> -> vector<32x128xf32>
    %120 = arith.addf %110, %119 : vector<32x128xf32>
    %c0_112 = arith.constant 0 : index
    %c0_113 = arith.constant 0 : index
    %121 = vector.load %arg6[%c0_112, %c0_113] : memref<1x128xf32, #tpu.memory_space<vmem>>, vector<1x128xf32>
    %122 = vector.broadcast %121 : vector<1x128xf32> to vector<32x128xf32>
    %123 = arith.addf %116, %122 : vector<32x128xf32>
    %cst_114 = arith.constant 0.000000e+00 : f32
    %124 = vector.broadcast %cst_114 : f32 to vector<32x128xf32>
    %125 = arith.maximumf %123, %124 : vector<32x128xf32>
    %126 = vector.broadcast %121 : vector<1x128xf32> to vector<32x128xf32>
    %127 = arith.addf %120, %126 : vector<32x128xf32>
    %cst_115 = arith.constant 0.000000e+00 : f32
    %128 = vector.broadcast %cst_115 : f32 to vector<32x128xf32>
    %129 = arith.maximumf %127, %128 : vector<32x128xf32>
    %130 = arith.maximumf %125, %129 : vector<32x128xf32>
    %c0_116 = arith.constant 0 : index
    %c0_117 = arith.constant 0 : index
    %131 = vector.load %arg16[%c0_116, %c0_117] : memref<32x128xf32, #tpu.memory_space<vmem>>, vector<32x128xf32>
    tpu.vector_store %arg16[%c0_116, %c0_117], %130 {strides = array<i32>} : memref<32x128xf32, #tpu.memory_space<vmem>>, vector<32x128xf32>,
    %c0_118 = arith.constant 0 : index
    %c0_119 = arith.constant 0 : index
    %132 = tpu.strided_load %arg16[%c0_118, %c0_119] {strides = array<i32: 2, 1>} : memref<32x128xf32, #tpu.memory_space<vmem>>, vector<16x128xf32>
    %c1_120 = arith.constant 1 : index
    %c0_121 = arith.constant 0 : index
    %133 = tpu.strided_load %arg16[%c1_120, %c0_121] {strides = array<i32: 2, 1>} : memref<32x128xf32, #tpu.memory_space<vmem>>, vector<16x128xf32>
    %134 = arith.maximumf %132, %133 : vector<16x128xf32>
    %c0_122 = arith.constant 0 : index
    %c0_123 = arith.constant 0 : index
    %135 = vector.load %arg17[%c0_122, %c0_123] : memref<16x128xf32, #tpu.memory_space<vmem>>, vector<16x128xf32>
    tpu.vector_store %arg17[%c0_122, %c0_123], %134 {strides = array<i32>} : memref<16x128xf32, #tpu.memory_space<vmem>>, vector<16x128xf32>,
    %cst_124 = arith.constant 0.000000e+00 : f32
    %136 = vector.broadcast %cst_124 : f32 to vector<2x128xf32>
    %c0_125 = arith.constant 0 : index
    %c0_126 = arith.constant 0 : index
    %137 = tpu.strided_load %arg17[%c0_125, %c0_126] {strides = array<i32: 8, 1>} : memref<16x128xf32, #tpu.memory_space<vmem>>, vector<2x128xf32>
    %138 = arith.truncf %137 : vector<2x128xf32> to vector<2x128xbf16>
    %c0_127 = arith.constant 0 : index
    %c0_128 = arith.constant 0 : index
    %c0_129 = arith.constant 0 : index
    %139 = vector.load %arg7[%c0_127, %c0_128, %c0_129] : memref<5x128x128xbf16, #tpu.memory_space<vmem>>, vector<1x128x128xbf16>
    %140 = vector.shape_cast %139 : vector<1x128x128xbf16> to vector<128x128xbf16>
    %cst_130 = arith.constant dense<0.000000e+00> : vector<2x128xf32>
    %141 = tpu.matmul %138, %140, %cst_130 {dimension_numbers = #tpu.dot_dimension_numbers<[1], [0], [0], [1], [0, 0, 1, 1], [], []>} : vector<2x128xbf16>, vector<128x128xbf16>, vector<2x128xf32> -> vector<2x128xf32>
    %142 = arith.addf %136, %141 : vector<2x128xf32>
    %c1_131 = arith.constant 1 : index
    %c0_132 = arith.constant 0 : index
    %143 = tpu.strided_load %arg17[%c1_131, %c0_132] {strides = array<i32: 8, 1>} : memref<16x128xf32, #tpu.memory_space<vmem>>, vector<2x128xf32>
    %144 = arith.truncf %143 : vector<2x128xf32> to vector<2x128xbf16>
    %c1_133 = arith.constant 1 : index
    %c0_134 = arith.constant 0 : index
    %c0_135 = arith.constant 0 : index
    %145 = vector.load %arg7[%c1_133, %c0_134, %c0_135] : memref<5x128x128xbf16, #tpu.memory_space<vmem>>, vector<1x128x128xbf16>
    %146 = vector.shape_cast %145 : vector<1x128x128xbf16> to vector<128x128xbf16>
    %cst_136 = arith.constant dense<0.000000e+00> : vector<2x128xf32>
    %147 = tpu.matmul %144, %146, %cst_136 {dimension_numbers = #tpu.dot_dimension_numbers<[1], [0], [0], [1], [0, 0, 1, 1], [], []>} : vector<2x128xbf16>, vector<128x128xbf16>, vector<2x128xf32> -> vector<2x128xf32>
    %148 = arith.addf %142, %147 : vector<2x128xf32>
    %c2_137 = arith.constant 2 : index
    %c0_138 = arith.constant 0 : index
    %149 = tpu.strided_load %arg17[%c2_137, %c0_138] {strides = array<i32: 8, 1>} : memref<16x128xf32, #tpu.memory_space<vmem>>, vector<2x128xf32>
    %150 = arith.truncf %149 : vector<2x128xf32> to vector<2x128xbf16>
    %c2_139 = arith.constant 2 : index
    %c0_140 = arith.constant 0 : index
    %c0_141 = arith.constant 0 : index
    %151 = vector.load %arg7[%c2_139, %c0_140, %c0_141] : memref<5x128x128xbf16, #tpu.memory_space<vmem>>, vector<1x128x128xbf16>
    %152 = vector.shape_cast %151 : vector<1x128x128xbf16> to vector<128x128xbf16>
    %cst_142 = arith.constant dense<0.000000e+00> : vector<2x128xf32>
    %153 = tpu.matmul %150, %152, %cst_142 {dimension_numbers = #tpu.dot_dimension_numbers<[1], [0], [0], [1], [0, 0, 1, 1], [], []>} : vector<2x128xbf16>, vector<128x128xbf16>, vector<2x128xf32> -> vector<2x128xf32>
    %154 = arith.addf %148, %153 : vector<2x128xf32>
    %c3_143 = arith.constant 3 : index
    %c0_144 = arith.constant 0 : index
    %155 = tpu.strided_load %arg17[%c3_143, %c0_144] {strides = array<i32: 8, 1>} : memref<16x128xf32, #tpu.memory_space<vmem>>, vector<2x128xf32>
    %156 = arith.truncf %155 : vector<2x128xf32> to vector<2x128xbf16>
    %c3_145 = arith.constant 3 : index
    %c0_146 = arith.constant 0 : index
    %c0_147 = arith.constant 0 : index
    %157 = vector.load %arg7[%c3_145, %c0_146, %c0_147] : memref<5x128x128xbf16, #tpu.memory_space<vmem>>, vector<1x128x128xbf16>
    %158 = vector.shape_cast %157 : vector<1x128x128xbf16> to vector<128x128xbf16>
    %cst_148 = arith.constant dense<0.000000e+00> : vector<2x128xf32>
    %159 = tpu.matmul %156, %158, %cst_148 {dimension_numbers = #tpu.dot_dimension_numbers<[1], [0], [0], [1], [0, 0, 1, 1], [], []>} : vector<2x128xbf16>, vector<128x128xbf16>, vector<2x128xf32> -> vector<2x128xf32>
    %160 = arith.addf %154, %159 : vector<2x128xf32>
    %c4_149 = arith.constant 4 : index
    %c0_150 = arith.constant 0 : index
    %161 = tpu.strided_load %arg17[%c4_149, %c0_150] {strides = array<i32: 8, 1>} : memref<16x128xf32, #tpu.memory_space<vmem>>, vector<2x128xf32>
    %162 = arith.truncf %161 : vector<2x128xf32> to vector<2x128xbf16>
    %c4_151 = arith.constant 4 : index
    %c0_152 = arith.constant 0 : index
    %c0_153 = arith.constant 0 : index
    %163 = vector.load %arg7[%c4_151, %c0_152, %c0_153] : memref<5x128x128xbf16, #tpu.memory_space<vmem>>, vector<1x128x128xbf16>
    %164 = vector.shape_cast %163 : vector<1x128x128xbf16> to vector<128x128xbf16>
    %cst_154 = arith.constant dense<0.000000e+00> : vector<2x128xf32>
    %165 = tpu.matmul %162, %164, %cst_154 {dimension_numbers = #tpu.dot_dimension_numbers<[1], [0], [0], [1], [0, 0, 1, 1], [], []>} : vector<2x128xbf16>, vector<128x128xbf16>, vector<2x128xf32> -> vector<2x128xf32>
    %166 = arith.addf %160, %165 : vector<2x128xf32>
    %c0_155 = arith.constant 0 : index
    %c0_156 = arith.constant 0 : index
    %167 = vector.load %arg8[%c0_155, %c0_156] : memref<1x128xf32, #tpu.memory_space<vmem>>, vector<1x128xf32>
    %168 = vector.broadcast %167 : vector<1x128xf32> to vector<2x128xf32>
    %169 = arith.addf %166, %168 : vector<2x128xf32>
    %cst_157 = arith.constant 0.000000e+00 : f32
    %170 = vector.broadcast %cst_157 : f32 to vector<2x128xf32>
    %171 = arith.maximumf %169, %170 : vector<2x128xf32>
    %172 = arith.truncf %171 : vector<2x128xf32> to vector<2x128xbf16>
    %c0_158 = arith.constant 0 : index
    %c0_159 = arith.constant 0 : index
    %173 = vector.load %arg9[%c0_158, %c0_159] : memref<128x128xbf16, #tpu.memory_space<vmem>>, vector<128x128xbf16>
    %cst_160 = arith.constant dense<0.000000e+00> : vector<2x128xf32>
    %174 = tpu.matmul %172, %173, %cst_160 {dimension_numbers = #tpu.dot_dimension_numbers<[1], [0], [0], [1], [0, 0, 1, 1], [], []>} : vector<2x128xbf16>, vector<128x128xbf16>, vector<2x128xf32> -> vector<2x128xf32>
    %c0_161 = arith.constant 0 : index
    %c0_162 = arith.constant 0 : index
    %175 = vector.load %arg10[%c0_161, %c0_162] : memref<1x128xf32, #tpu.memory_space<vmem>>, vector<1x128xf32>
    %176 = vector.broadcast %175 : vector<1x128xf32> to vector<2x128xf32>
    %177 = arith.addf %174, %176 : vector<2x128xf32>
    %cst_163 = arith.constant 0.000000e+00 : f32
    %178 = vector.broadcast %cst_163 : f32 to vector<2x128xf32>
    %179 = arith.maximumf %177, %178 : vector<2x128xf32>
    %180 = arith.truncf %179 : vector<2x128xf32> to vector<2x128xbf16>
    %c0_164 = arith.constant 0 : index
    %c0_165 = arith.constant 0 : index
    %181 = vector.load %arg11[%c0_164, %c0_165] : memref<128x128xbf16, #tpu.memory_space<vmem>>, vector<128x128xbf16>
    %cst_166 = arith.constant dense<0.000000e+00> : vector<2x128xf32>
    %182 = tpu.matmul %180, %181, %cst_166 {dimension_numbers = #tpu.dot_dimension_numbers<[1], [0], [0], [1], [0, 0, 1, 1], [], []>} : vector<2x128xbf16>, vector<128x128xbf16>, vector<2x128xf32> -> vector<2x128xf32>
    %c0_167 = arith.constant 0 : index
    %c0_168 = arith.constant 0 : index
    %183 = vector.load %arg12[%c0_167, %c0_168] : memref<1x128xf32, #tpu.memory_space<vmem>>, vector<1x128xf32>
    %184 = vector.broadcast %183 : vector<1x128xf32> to vector<2x128xf32>
    %185 = arith.addf %182, %184 : vector<2x128xf32>
    %186 = vector.extract_strided_slice %185 {offsets = [0, 0], sizes = [2, 10], strides = [1, 1]} : vector<2x128xf32> to vector<2x10xf32>
    %c0_169 = arith.constant 0 : index
    %c0_170 = arith.constant 0 : index
    %187 = vector.load %arg13[%c0_169, %c0_170] : memref<2x10xf32, #tpu.memory_space<vmem>>, vector<2x10xf32>
    tpu.vector_store %arg13[%c0_169, %c0_170], %186 {strides = array<i32>} : memref<2x10xf32, #tpu.memory_space<vmem>>, vector<2x10xf32>,
    return
  }
}

</mosaic_0001>

<bundles_post_ra>
// kernel: cnn_forward.1
= control target key start
LH: loop header
LB: loop body
LE: loop exit
PB: predicated region body
PF: predicated region fallthrough
CT: control target
= control target key end

     0   :  { %18 = vsyncpa [#allocation7], 0  ;;  %s6130_s0 = inlined_call_operand.vmem [shape: f32[72,128], index: 0, kind: input, shape index: {}]   ;;  %s6131_s1 = inlined_call_operand.vmem [shape: bf16[5,128,128], index: 1, kind: input, shape index: {}]   ;;  %s6132_s2 = inlined_call_operand.vmem [shape: bf16[5,128,128], index: 2, kind: input, shape index: {}]   ;;  %s6133_s3 = inlined_call_operand.vmem [shape: f32[1,128], index: 3, kind: input, shape index: {}]   ;;  %s6134_s4 = inlined_call_operand.vmem [shape: bf16[5,128,128], index: 4, kind: input, shape index: {}]   ;;  %s6135_s5 = inlined_call_operand.vmem [shape: bf16[5,128,128], index: 5, kind: input, shape index: {}]   ;;  %s6136_s6 = inlined_call_operand.vmem [shape: f32[1,128], index: 6, kind: input, shape index: {}]   ;;  %s6137_s7 = inlined_call_operand.hbm [shape: bf16[5,128,128], index: 7, kind: input, shape index: {}]   ;;  %s6138_s8 = inlined_call_operand.vmem [shape: f32[1,128], index: 8, kind: input, shape index: {}]   ;;  %s6139_s9 = inlined_call_operand.vmem [shape: bf16[128,128], index: 9, kind: input, shape index: {}]   ;;  %s6140_s10 = inlined_call_operand.vmem [shape: f32[1,128], index: 10, kind: input, shape index: {}]   ;;  %s6141_s11 = inlined_call_operand.vmem [shape: bf16[128,128], index: 11, kind: input, shape index: {}]   ;;  %s6142_s12 = inlined_call_operand.vmem [shape: f32[1,128], index: 12, kind: input, shape index: {}]   ;;  %s6143_s13 = inlined_call_operand.hbm [shape: f32[2,10], index: 13, kind: output, shape index: {}]  }
   0x1   :  { %19 = vsyncpa [#allocation8], 0  ;;  %s5278_s25 = smov [#allocation6]   ;;  %s5230_s29 = scalar_lea.hbm %s6137_s7, 5120 }
   0x2   :  { %s39_s26 = sshll.u32 %s5278_s25, 4  ;;  %p5231_p0 = scmp.ne.s32.totalorder %s6137_s7, %s5230_s29  ;;  %s40_s26 = int_to_ptr.vmem [resolvable:$true] %s39_s26 }
   0x3   :  { %p5234_p1 = scmp.lt.u32.totalorder %s5230_s29, %s6137_s7 }
   0x5   :  { %p5236_p2 = pnand %p5234_p1, %p5231_p0 }
   0x7   :  { %5239 = shalt.err (!%p5236_p2)
}
   0x8   :  { %s5240_s17 = scalar_lea.vmem %s40_s26, 5120  ;;  %p5245_p4 = scmp.lt.s32.totalorder %s40_s26, %s40_s26 }
   0x9   :  { %p5241_p3 = scmp.ne.s32.totalorder %s40_s26, %s5240_s17  ;;  %p5246_p5 = scmp.lt.s32.totalorder %s5240_s17, %s5240_s17 }
   0xb   :  { %p5247_p6 = por %p5246_p5, %p5245_p4 }
   0xd   :  { %p5248_p7 = pnand %p5247_p6, %p5241_p3 }
   0xf   :  { %5251 = shalt.err (!%p5248_p7)
}
  0x10   :  { %s5279_s18 = smov 64   ;;  %s5280_s19 = smov 4  }
  0x11   :  { %45 = dma.hbm_to_vmem [thread:$0]  %s6137_s7, 5120, %s40_s26, [#allocation7], %s5279_s18, %s5279_s18, %s5280_s19  }
  0x12   :  { %5274 = dma.done.wait [#allocation7], 5120  }
  0x13   :  { %5275 = vsyncadd [#allocation7], 4294962176  ;;  %v5013_v0 = vld [vmem:[%s6131_s1 + $0x40] sm:$0xff]   ;;  %v5015_v2 = vld [vmem:[%s6131_s1 + $0x48] sm:$0xff]   ;;  %vm5282_vm0 = vmmov 0   ;;  %s5283_s23 = smov [#allocation9]  }
  0x14   :  { %v5014_v1 = vld [vmem:[%s6132_s2 + $0x40] sm:$0xff]   ;;  %4331 = vmatprep.subr.bf16.mxu0 %v5013_v0  ;;  %v5016_v3 = vld [vmem:[%s6132_s2 + $0x48] sm:$0xff]   ;;  %v5017_v4 = vld [vmem:[%s6131_s1 + $0x50] sm:$0xff]   ;;  %s3562_s24 = sshll.u32 %s5283_s23, 4  ;;  %vm3554_vm1 = vcmask 74752   ;;  %s3563_s24 = int_to_ptr.vmem [resolvable:$true] %s3562_s24 }
  0x15   :  { %4379 = vmatprep.subr.bf16.mxu1 %v5014_v1  ;;  %4332 = vmatpush3.bf16.msra.mxu0 %v5013_v0  ;;  %v5018_v5 = vld [vmem:[%s6132_s2 + $0x50] sm:$0xff]   ;;  %v5019_v6 = vld [vmem:[%s6131_s1 + $0x58] sm:$0xff]   ;;  %v5021_v8 = vld [vmem:[%s6131_s1 + $0x60] sm:$0xff]   ;;  %p5257_p9 = scmp.lt.s32.totalorder %s3563_s24, %s3563_s24 }
  0x16   :  { %4380 = vmatpush3.bf16.msra.mxu1 %v5014_v1  ;;  %4333 = vmatprep.subr.bf16.mxu0 %v5015_v2  ;;  %v5020_v7 = vld [vmem:[%s6132_s2 + $0x58] sm:$0xff]   ;;  %v5022_v9 = vld [vmem:[%s6132_s2 + $0x60] sm:$0xff]   ;;  %v5023_v10 = vld [vmem:[%s6131_s1 + $0x68] sm:$0xff]  }
  0x17   :  { %4381 = vmatprep.subr.bf16.mxu1 %v5016_v3  ;;  %v105_v11 = vld [vmem:[%s6130_s0 + $0x1] sm:$0xff]  ;;  %v106_v12 = vld [vmem:[%s6130_s0 + $0x9] sm:$0xff]  ;;  %v5027_v17 = vld [vmem:[%s6131_s1 + $0x78] sm:$0xff]  }
  0x18   :  { %v5024_v13 = vld [vmem:[%s6132_s2 + $0x68] sm:$0xff]   ;;  %v113_v14 = vpack.c.bf16 %v106_v12, %v105_v11  ;;  %v5025_v15 = vld [vmem:[%s6131_s1 + $0x70] sm:$0xff]   ;;  %v5028_v18 = vld [vmem:[%s6132_s2 + $0x78] sm:$0xff]  }
  0x19   :  { %4334 = vmatpush3.bf16.msra.mxu0 %v5015_v2  ;;  %v5026_v16 = vld [vmem:[%s6132_s2 + $0x70] sm:$0xff]   ;;  %v108_v20 = vld [vmem:[%s6130_s0 + $0x19] sm:$0xff]  ;;  %v109_v23 = vld [vmem:[%s6130_s0 + $0x21] sm:$0xff] }
  0x1a   :  { %4382 = vmatpush3.bf16.msra.mxu1 %v5016_v3  ;;  %4335 = vmatprep.subr.bf16.mxu0 %v5017_v4  ;;  %v107_v19 = vld [vmem:[%s6130_s0 + $0x11] sm:$0xff]  ;;  %v5029_v21 = vld [vmem:[%s6131_s1] sm:$0xff]   ;;  %v110_v25 = vld [vmem:[%s6130_s0 + $0x29] sm:$0xff] }
  0x1b   :  { %4383 = vmatprep.subr.bf16.mxu1 %v5018_v5  ;;  %4347 = vmatprep.mubr.bf16.mxu0 %v113_v14  ;;  %v5030_v22 = vld [vmem:[%s6132_s2] sm:$0xff]   ;;  %v114_v24 = vpack.c.bf16 %v108_v20, %v107_v19  ;;  %v5031_v26 = vld [vmem:[%s6131_s1 + $0x8] sm:$0xff]   ;;  %v115_v28 = vpack.c.bf16 %v110_v25, %v109_v23  ;;  %v111_v29 = vld [vmem:[%s6130_s0 + $0x31] sm:$0xff] }
  0x1c   :  { %4395 = vmatprep.mubr.bf16.mxu1 %v113_v14  ;;  %v5032_v27 = vld [vmem:[%s6132_s2 + $0x8] sm:$0xff]   ;;  %v112_v30 = vld [vmem:[%s6130_s0 + $0x39] sm:$0xff]  ;;  %v5033_v31 = vld [vmem:[%s6131_s1 + $0x10] sm:$0xff]  }
  0x1d   :  { %4336 = vmatpush3.bf16.msra.mxu0 %v5017_v4  ;;  %v5034_v32 = vld [vmem:[%s6132_s2 + $0x10] sm:$0xff]   ;;  %v61_v33 = vld [vmem:[%s6130_s0] sm:$0xff]  ;;  %v116_v34 = vpack.c.bf16 %v112_v30, %v111_v29  ;;  %v62_v35 = vld [vmem:[%s6130_s0 + $0x8] sm:$0xff] }
  0x1e   :  { %4384 = vmatpush3.bf16.msra.mxu1 %v5018_v5  ;;  %4337 = vmatprep.subr.bf16.mxu0 %v5019_v6  ;;  %v5035_v36 = vld [vmem:[%s6131_s1 + $0x18] sm:$0xff]   ;;  %v69_v38 = vpack.c.bf16 %v62_v35, %v61_v33  ;;  %v5037_v39 = vld [vmem:[%s6131_s1 + $0x20] sm:$0xff]   ;;  %v5039_v41 = vld [vmem:[%s6131_s1 + $0x28] sm:$0xff]  }
  0x1f   :  { %4385 = vmatprep.subr.bf16.mxu1 %v5020_v7  ;;  %v5036_v37 = vld [vmem:[%s6132_s2 + $0x18] sm:$0xff]   ;;  %v5038_v40 = vld [vmem:[%s6132_s2 + $0x20] sm:$0xff]   ;;  %v5040_v42 = vld [vmem:[%s6132_s2 + $0x28] sm:$0xff]  }
  0x20   :  { %v5041_v43 = vld [vmem:[%s6131_s1 + $0x30] sm:$0xff]   ;;  %v5043_v45 = vld [vmem:[%s6131_s1 + $0x38] sm:$0xff]   ;;  %v5045_v47 = vld [vmem:[%s6131_s1 + $0x80] sm:$0xff]  }
  0x21   :  { %4338 = vmatpush3.bf16.msra.mxu0 %v5019_v6  ;;  %v5042_v44 = vld [vmem:[%s6132_s2 + $0x30] sm:$0xff]   ;;  %v5044_v46 = vld [vmem:[%s6132_s2 + $0x38] sm:$0xff]   ;;  %v5046_v50 = vld [vmem:[%s6132_s2 + $0x80] sm:$0xff]  }
  0x22   :  { %4386 = vmatpush3.bf16.msra.mxu1 %v5020_v7  ;;  %4339 = vmatprep.subr.bf16.mxu0 %v5021_v8  ;;  %v63_v48 = vld [vmem:[%s6130_s0 + $0x10] sm:$0xff]  ;;  %v64_v49 = vld [vmem:[%s6130_s0 + $0x18] sm:$0xff]  ;;  %v65_v51 = vld [vmem:[%s6130_s0 + $0x20] sm:$0xff] }
  0x23   :  { %4387 = vmatprep.subr.bf16.mxu1 %v5022_v9  ;;  %v70_v52 = vpack.c.bf16 %v64_v49, %v63_v48  ;;  %v66_v53 = vld [vmem:[%s6130_s0 + $0x28] sm:$0xff]  ;;  %v67_v57 = vld [vmem:[%s6130_s0 + $0x30] sm:$0xff]  ;;  %v68_v58 = vld [vmem:[%s6130_s0 + $0x38] sm:$0xff] }
  0x24   :  { %v5047_v54 = vld [vmem:[%s6131_s1 + $0x88] sm:$0xff]   ;;  %v71_v56 = vpack.c.bf16 %v66_v53, %v65_v51  ;;  %v5049_v59 = vld [vmem:[%s6131_s1 + $0x90] sm:$0xff]   ;;  %v72_v62 = vpack.c.bf16 %v68_v58, %v67_v57  ;;  %v5051_v0 = vld [vmem:[%s6131_s1 + $0x98] sm:$0xff]  }
  0x25   :  { %4340 = vmatpush3.bf16.msra.mxu0 %v5021_v8  ;;  %v5048_v55 = vld [vmem:[%s6132_s2 + $0x88] sm:$0xff]   ;;  %v5050_v60 = vld [vmem:[%s6132_s2 + $0x90] sm:$0xff]   ;;  %v5052_v1 = vld [vmem:[%s6132_s2 + $0x98] sm:$0xff]  }
  0x26   :  { %4388 = vmatpush3.bf16.msra.mxu1 %v5022_v9  ;;  %4341 = vmatprep.subr.bf16.mxu0 %v5023_v10  ;;  %v603_v61 = vld [vmem:[%s6130_s0 + $0x2] sm:$0xff]  ;;  %v604_v63 = vld [vmem:[%s6130_s0 + $0xa] sm:$0xff]  ;;  %v5059_v9 = vld [vmem:[%s6131_s1 + $0xb8] sm:$0xff]  }
  0x27   :  { %4389 = vmatprep.subr.bf16.mxu1 %v5024_v13  ;;  %v611_v2 = vpack.c.bf16 %v604_v63, %v603_v61  ;;  %v5053_v3 = vld [vmem:[%s6131_s1 + $0xa0] sm:$0xff]   ;;  %v5055_v5 = vld [vmem:[%s6131_s1 + $0xa8] sm:$0xff]   ;;  %v5057_v7 = vld [vmem:[%s6131_s1 + $0xb0] sm:$0xff]  }
  0x28   :  { %v5054_v4 = vld [vmem:[%s6132_s2 + $0xa0] sm:$0xff]   ;;  %v5056_v6 = vld [vmem:[%s6132_s2 + $0xa8] sm:$0xff]   ;;  %v5058_v8 = vld [vmem:[%s6132_s2 + $0xb0] sm:$0xff]  }
  0x29   :  { %4342 = vmatpush3.bf16.msra.mxu0 %v5023_v10  ;;  %v5060_v10 = vld [vmem:[%s6132_s2 + $0xb8] sm:$0xff]   ;;  %v5062_v14 = vld [vmem:[%s6132_s2 + $0xc0] sm:$0xff]   ;;  %v5064_v19 = vld [vmem:[%s6132_s2 + $0xc8] sm:$0xff]  }
  0x2a   :  { %4390 = vmatpush3.bf16.msra.mxu1 %v5024_v13  ;;  %4343 = vmatprep.subr.bf16.mxu0 %v5025_v15  ;;  %v605_v11 = vld [vmem:[%s6130_s0 + $0x12] sm:$0xff]  ;;  %v606_v12 = vld [vmem:[%s6130_s0 + $0x1a] sm:$0xff]  ;;  %v891_v25 = vld [vmem:[%s6130_s0 + $0x3] sm:$0xff] }
  0x2b   :  { %4391 = vmatprep.subr.bf16.mxu1 %v5026_v16  ;;  %v5061_v13 = vld [vmem:[%s6131_s1 + $0xc0] sm:$0xff]   ;;  %v5065_v23 = vld [vmem:[%s6131_s1 + $0xd0] sm:$0xff]   ;;  %v5068_v29 = vld [vmem:[%s6132_s2 + $0xd8] sm:$0xff]  }
  0x2c   :  { %v5071_v33 = vld [vmem:[%s6131_s1 + $0xe8] sm:$0xff]   ;;  %v5073_v35 = vld [vmem:[%s6131_s1 + $0xf0] sm:$0xff]   ;;  %v5084_v57 = vld [vmem:[%s6132_s2 + $0x118] sm:$0xff]  }
  0x2d   :  { %4344 = vmatpush3.bf16.msra.mxu0 %v5025_v15  ;;  %v607_v15 = vld [vmem:[%s6130_s0 + $0x22] sm:$0xff]  ;;  %v897_v49 = vld [vmem:[%s6130_s0 + $0x33] sm:$0xff] }
  0x2e   :  { %4392 = vmatpush3.bf16.msra.mxu1 %v5026_v16  ;;  %4345 = vmatprep.subr.bf16.mxu0 %v5027_v17  ;;  %v608_v16 = vld [vmem:[%s6130_s0 + $0x2a] sm:$0xff] }
  0x2f   :  { %4393 = vmatprep.subr.bf16.mxu1 %v5028_v18  ;;  %v613_v20 = vpack.c.bf16 %v608_v16, %v607_v15  ;;  %v5081_v51 = vld [vmem:[%s6131_s1 + $0x110] sm:$0xff]   ;;  %v1179_v53 = vld [vmem:[%s6130_s0 + $0x4] sm:$0xff] }
  0x30   :  { %v5087_v61 = vld [vmem:[%s6131_s1 + $0x128] sm:$0xff]   ;;  %v5089_v63 = vld [vmem:[%s6131_s1 + $0x130] sm:$0xff]  }
  0x31   :  { %4346 = vmatpush3.bf16.msra.mxu0 %v5027_v17  ;;  %v612_v17 = vpack.c.bf16 %v606_v12, %v605_v11  ;;  %v5093_v12 = vld [vmem:[%s6134_s4 + $0x40] sm:$0xff]   ;;  %v5096_v15 = vld [vmem:[%s6135_s5 + $0x48] sm:$0xff]   ;;  %v5097_v16 = vld [vmem:[%s6134_s4 + $0x50] sm:$0xff]  }
  0x32   :  { %4394 = vmatpush3.bf16.msra.mxu1 %v5028_v18  ;;  %4355 = vmatprep.subr.bf16.mxu0 %v5029_v21  ;;  %v5063_v18 = vld [vmem:[%s6131_s1 + $0xc8] sm:$0xff]  }
  0x33   :  { %4403 = vmatprep.subr.bf16.mxu1 %v5030_v22 }
  0x34   :  { %4348 = vmatmul.mubr.bf16.vlgmr.msra.gmra.mrb[0].mxu0 %v114_v24 }
  0x35   :  { %4356 = vmatpush3.bf16.msra.mxu0 %v5029_v21  ;;  %4396 = vmatmul.mubr.bf16.vlgmr.msra.gmra.mrb[0].mxu1 %v114_v24  ;;  %v609_v21 = vld [vmem:[%s6130_s0 + $0x32] sm:$0xff] }
  0x36   :  { %4404 = vmatpush3.bf16.msra.mxu1 %v5030_v22  ;;  %4357 = vmatprep.subr.bf16.mxu0 %v5031_v26  ;;  %v610_v22 = vld [vmem:[%s6130_s0 + $0x3a] sm:$0xff]  ;;  %v5066_v24 = vld [vmem:[%s6132_s2 + $0xd0] sm:$0xff]  }
  0x37   :  { %4405 = vmatprep.subr.bf16.mxu1 %v5032_v27  ;;  %4351 = vmatprep.mubr.bf16.mxu0 %v115_v28 }
  0x38   :  { %4399 = vmatprep.mubr.bf16.mxu1 %v115_v28  ;;  %v614_v28 = vpack.c.bf16 %v610_v22, %v609_v21  ;;  %v5102_v21 = vld [vmem:[%s6135_s5 + $0x60] sm:$0xff]   ;;  %v5103_v22 = vld [vmem:[%s6134_s4 + $0x68] sm:$0xff]  }
  0x39   :  { %4358 = vmatpush3.bf16.msra.mxu0 %v5031_v26  ;;  %v892_v26 = vld [vmem:[%s6130_s0 + $0xb] sm:$0xff] }
  0x3a   :  { %4406 = vmatpush3.bf16.msra.mxu1 %v5032_v27  ;;  %4359 = vmatprep.subr.bf16.mxu0 %v5033_v31  ;;  %v5067_v27 = vld [vmem:[%s6131_s1 + $0xd8] sm:$0xff]   ;;  %v899_v30 = vpack.c.bf16 %v892_v26, %v891_v25  ;;  %v5105_v25 = vld [vmem:[%s6134_s4 + $0x70] sm:$0xff]  }
  0x3b   :  { %4407 = vmatprep.subr.bf16.mxu1 %v5034_v32  ;;  %v5106_v26 = vld [vmem:[%s6135_s5 + $0x70] sm:$0xff]  }
  0x3c   :  { %4352 = vmatmul.mubr.bf16.gmra.mrb[4].mxu0 %v116_v34 }
  0x3d   :  { %4360 = vmatpush3.bf16.msra.mxu0 %v5033_v31  ;;  %4400 = vmatmul.mubr.bf16.gmra.mrb[4].mxu1 %v116_v34  ;;  %v5069_v31 = vld [vmem:[%s6131_s1 + $0xe0] sm:$0xff]   ;;  %v5072_v34 = vld [vmem:[%s6132_s2 + $0xe8] sm:$0xff]  }
  0x3e   :  { %4408 = vmatpush3.bf16.msra.mxu1 %v5034_v32  ;;  %4361 = vmatprep.subr.bf16.mxu0 %v5035_v36  ;;  %v5070_v32 = vld [vmem:[%s6132_s2 + $0xe0] sm:$0xff]  }
  0x3f   :  { %4409 = vmatprep.subr.bf16.mxu1 %v5036_v37  ;;  %4371 = vmatprep.mubr.bf16.mxu0 %v69_v38 }
  0x40   :  { %4419 = vmatprep.mubr.bf16.mxu1 %v69_v38  ;;  %v5076_v38 = vld [vmem:[%s6132_s2 + $0xf8] sm:$0xff]  }
  0x41   :  { %4362 = vmatpush3.bf16.msra.mxu0 %v5035_v36  ;;  %v5074_v36 = vld [vmem:[%s6132_s2 + $0xf0] sm:$0xff]  }
  0x42   :  { %4410 = vmatpush3.bf16.msra.mxu1 %v5036_v37  ;;  %4363 = vmatprep.subr.bf16.mxu0 %v5037_v39  ;;  %v5075_v37 = vld [vmem:[%s6131_s1 + $0xf8] sm:$0xff]  }
  0x43   :  { %4411 = vmatprep.subr.bf16.mxu1 %v5038_v40 }
  0x45   :  { %4364 = vmatpush3.bf16.msra.mxu0 %v5037_v39  ;;  %v893_v39 = vld [vmem:[%s6130_s0 + $0x13] sm:$0xff] }
  0x46   :  { %4412 = vmatpush3.bf16.msra.mxu1 %v5038_v40  ;;  %4365 = vmatprep.subr.bf16.mxu0 %v5039_v41  ;;  %v894_v40 = vld [vmem:[%s6130_s0 + $0x1b] sm:$0xff] }
  0x47   :  { %4413 = vmatprep.subr.bf16.mxu1 %v5040_v42 }
  0x49   :  { %4366 = vmatpush3.bf16.msra.mxu0 %v5039_v41  ;;  %v5077_v41 = vld [vmem:[%s6131_s1 + $0x100] sm:$0xff]  }
  0x4a   :  { %4414 = vmatpush3.bf16.msra.mxu1 %v5040_v42  ;;  %4367 = vmatprep.subr.bf16.mxu0 %v5041_v43  ;;  %v5078_v42 = vld [vmem:[%s6132_s2 + $0x100] sm:$0xff]  }
  0x4b   :  { %4415 = vmatprep.subr.bf16.mxu1 %v5042_v44 }
  0x4d   :  { %4368 = vmatpush3.bf16.msra.mxu0 %v5041_v43  ;;  %v895_v43 = vld [vmem:[%s6130_s0 + $0x23] sm:$0xff] }
  0x4e   :  { %4416 = vmatpush3.bf16.msra.mxu1 %v5042_v44  ;;  %4369 = vmatprep.subr.bf16.mxu0 %v5043_v45  ;;  %v896_v44 = vld [vmem:[%s6130_s0 + $0x2b] sm:$0xff] }
  0x4f   :  { %4417 = vmatprep.subr.bf16.mxu1 %v5044_v46  ;;  %v901_v48 = vpack.c.bf16 %v896_v44, %v895_v43 }
  0x51   :  { %4370 = vmatpush3.bf16.msra.mxu0 %v5043_v45  ;;  %v900_v45 = vpack.c.bf16 %v894_v40, %v893_v39 }
  0x52   :  { %4418 = vmatpush3.bf16.msra.mxu1 %v5044_v46  ;;  %4427 = vmatprep.subr.bf16.mxu0 %v5045_v47  ;;  %v5079_v46 = vld [vmem:[%s6131_s1 + $0x108] sm:$0xff]  }
  0x53   :  { %4451 = vmatprep.subr.bf16.mxu1 %v5046_v50 }
  0x54   :  { %4372 = vmatmul.mubr.bf16.vlgmr.msra.gmra.mrb[0].mxu0 %v70_v52 }
  0x55   :  { %4420 = vmatmul.mubr.bf16.vlgmr.msra.gmra.mrb[0].mxu1 %v70_v52  ;;  %4428 = vmatpush3.bf16.msra.mxu0 %v5045_v47  ;;  %v5080_v47 = vld [vmem:[%s6132_s2 + $0x108] sm:$0xff]   ;;  %v5082_v52 = vld [vmem:[%s6132_s2 + $0x110] sm:$0xff]  }
  0x56   :  { %4452 = vmatpush3.bf16.msra.mxu1 %v5046_v50  ;;  %4429 = vmatprep.subr.bf16.mxu0 %v5047_v54  ;;  %v898_v50 = vld [vmem:[%s6130_s0 + $0x3b] sm:$0xff] }
  0x57   :  { %4453 = vmatprep.subr.bf16.mxu1 %v5048_v55  ;;  %4375 = vmatprep.mubr.bf16.mxu0 %v71_v56 }
  0x58   :  { %4423 = vmatprep.mubr.bf16.mxu1 %v71_v56  ;;  %v902_v56 = vpack.c.bf16 %v898_v50, %v897_v49 }
  0x59   :  { %4430 = vmatpush3.bf16.msra.mxu0 %v5047_v54  ;;  %v1180_v54 = vld [vmem:[%s6130_s0 + $0xc] sm:$0xff] }
  0x5a   :  { %4454 = vmatpush3.bf16.msra.mxu1 %v5048_v55  ;;  %4431 = vmatprep.subr.bf16.mxu0 %v5049_v59  ;;  %v5083_v55 = vld [vmem:[%s6131_s1 + $0x118] sm:$0xff]   ;;  %v1187_v58 = vpack.c.bf16 %v1180_v54, %v1179_v53 }
  0x5b   :  { %4455 = vmatprep.subr.bf16.mxu1 %v5050_v60 }
  0x5c   :  { %4376 = vmatmul.mubr.bf16.gmra.mrb[4].mxu0 %v72_v62 }
  0x5d   :  { %4432 = vmatpush3.bf16.msra.mxu0 %v5049_v59  ;;  %4424 = vmatmul.mubr.bf16.gmra.mrb[4].mxu1 %v72_v62  ;;  %v5085_v59 = vld [vmem:[%s6131_s1 + $0x120] sm:$0xff]   ;;  %v5088_v62 = vld [vmem:[%s6132_s2 + $0x128] sm:$0xff]  }
  0x5e   :  { %4456 = vmatpush3.bf16.msra.mxu1 %v5050_v60  ;;  %4433 = vmatprep.subr.bf16.mxu0 %v5051_v0  ;;  %v5086_v60 = vld [vmem:[%s6132_s2 + $0x120] sm:$0xff]  }
  0x5f   :  { %4457 = vmatprep.subr.bf16.mxu1 %v5052_v1  ;;  %4443 = vmatprep.mubr.bf16.mxu0 %v611_v2 }
  0x60   :  { %4467 = vmatprep.mubr.bf16.mxu1 %v611_v2  ;;  %v5092_v2 = vld [vmem:[%s6132_s2 + $0x138] sm:$0xff]  }
  0x61   :  { %4434 = vmatpush3.bf16.msra.mxu0 %v5051_v0  ;;  %v5090_v0 = vld [vmem:[%s6132_s2 + $0x130] sm:$0xff]  }
  0x62   :  { %4458 = vmatpush3.bf16.msra.mxu1 %v5052_v1  ;;  %4435 = vmatprep.subr.bf16.mxu0 %v5053_v3  ;;  %v5091_v1 = vld [vmem:[%s6131_s1 + $0x138] sm:$0xff]  }
  0x63   :  { %4459 = vmatprep.subr.bf16.mxu1 %v5054_v4 }
  0x65   :  { %4436 = vmatpush3.bf16.msra.mxu0 %v5053_v3  ;;  %v1181_v3 = vld [vmem:[%s6130_s0 + $0x14] sm:$0xff] }
  0x66   :  { %4460 = vmatpush3.bf16.msra.mxu1 %v5054_v4  ;;  %4437 = vmatprep.subr.bf16.mxu0 %v5055_v5  ;;  %v1182_v4 = vld [vmem:[%s6130_s0 + $0x1c] sm:$0xff] }
  0x67   :  { %4461 = vmatprep.subr.bf16.mxu1 %v5056_v6 }
  0x69   :  { %4438 = vmatpush3.bf16.msra.mxu0 %v5055_v5  ;;  %v1183_v5 = vld [vmem:[%s6130_s0 + $0x24] sm:$0xff] }
  0x6a   :  { %4462 = vmatpush3.bf16.msra.mxu1 %v5056_v6  ;;  %4439 = vmatprep.subr.bf16.mxu0 %v5057_v7  ;;  %v1184_v6 = vld [vmem:[%s6130_s0 + $0x2c] sm:$0xff] }
  0x6b   :  { %4463 = vmatprep.subr.bf16.mxu1 %v5058_v8 }
  0x6d   :  { %4440 = vmatpush3.bf16.msra.mxu0 %v5057_v7  ;;  %v1188_v7 = vpack.c.bf16 %v1182_v4, %v1181_v3 }
  0x6e   :  { %4464 = vmatpush3.bf16.msra.mxu1 %v5058_v8  ;;  %4441 = vmatprep.subr.bf16.mxu0 %v5059_v9  ;;  %v1189_v8 = vpack.c.bf16 %v1184_v6, %v1183_v5 }
  0x6f   :  { %4465 = vmatprep.subr.bf16.mxu1 %v5060_v10 }
  0x71   :  { %4442 = vmatpush3.bf16.msra.mxu0 %v5059_v9  ;;  %v1185_v9 = vld [vmem:[%s6130_s0 + $0x34] sm:$0xff] }
  0x72   :  { %4466 = vmatpush3.bf16.msra.mxu1 %v5060_v10  ;;  %4475 = vmatprep.subr.bf16.mxu0 %v5061_v13  ;;  %v1186_v10 = vld [vmem:[%s6130_s0 + $0x3c] sm:$0xff] }
  0x73   :  { %4499 = vmatprep.subr.bf16.mxu1 %v5062_v14  ;;  %v1190_v11 = vpack.c.bf16 %v1186_v10, %v1185_v9 }
  0x74   :  { %4444 = vmatmul.mubr.bf16.vlgmr.msra.gmra.mrb[0].mxu0 %v612_v17 }
  0x75   :  { %4468 = vmatmul.mubr.bf16.vlgmr.msra.gmra.mrb[0].mxu1 %v612_v17  ;;  %4476 = vmatpush3.bf16.msra.mxu0 %v5061_v13  ;;  %v5094_v13 = vld [vmem:[%s6135_s5 + $0x40] sm:$0xff]   ;;  %v5098_v17 = vld [vmem:[%s6135_s5 + $0x50] sm:$0xff]  }
  0x76   :  { %4500 = vmatpush3.bf16.msra.mxu1 %v5062_v14  ;;  %4477 = vmatprep.subr.bf16.mxu0 %v5063_v18  ;;  %v5095_v14 = vld [vmem:[%s6134_s4 + $0x48] sm:$0xff]  }
  0x77   :  { %4501 = vmatprep.subr.bf16.mxu1 %v5064_v19  ;;  %4447 = vmatprep.mubr.bf16.mxu0 %v613_v20 }
  0x78   :  { %4471 = vmatprep.mubr.bf16.mxu1 %v613_v20  ;;  %v5101_v20 = vld [vmem:[%s6134_s4 + $0x60] sm:$0xff]  }
  0x79   :  { %4478 = vmatpush3.bf16.msra.mxu0 %v5063_v18  ;;  %v5099_v18 = vld [vmem:[%s6134_s4 + $0x58] sm:$0xff]  }
  0x7a   :  { %4502 = vmatpush3.bf16.msra.mxu1 %v5064_v19  ;;  %4479 = vmatprep.subr.bf16.mxu0 %v5065_v23  ;;  %v5100_v19 = vld [vmem:[%s6135_s5 + $0x58] sm:$0xff]  }
  0x7b   :  { %4503 = vmatprep.subr.bf16.mxu1 %v5066_v24 }
  0x7c   :  { %4448 = vmatmul.mubr.bf16.gmra.mrb[4].mxu0 %v614_v28 }
  0x7d   :  { %4480 = vmatpush3.bf16.msra.mxu0 %v5065_v23  ;;  %4472 = vmatmul.mubr.bf16.gmra.mrb[4].mxu1 %v614_v28  ;;  %v5104_v23 = vld [vmem:[%s6135_s5 + $0x68] sm:$0xff]   ;;  %v5108_v28 = vld [vmem:[%s6135_s5 + $0x78] sm:$0xff]  }
  0x7e   :  { %4504 = vmatpush3.bf16.msra.mxu1 %v5066_v24  ;;  %4481 = vmatprep.subr.bf16.mxu0 %v5067_v27  ;;  %v5281_v24 = vmov 0.0  }
  0x7f   :  { %4505 = vmatprep.subr.bf16.mxu1 %v5068_v29  ;;  %4491 = vmatprep.mubr.bf16.mxu0 %v899_v30  ;;  %60 = vst [vmem:[#allocation3 + $0x20] sm:$0xff] %v5281_v24 }
  0x80   :  { %4515 = vmatprep.mubr.bf16.mxu1 %v899_v30  ;;  %v5783_v30 = vld [vmem:[%s6135_s5] sm:$0xff]  }
  0x81   :  { %4482 = vmatpush3.bf16.msra.mxu0 %v5067_v27  ;;  %v5107_v27 = vld [vmem:[%s6134_s4 + $0x78] sm:$0xff]  }
  0x82   :  { %4506 = vmatpush3.bf16.msra.mxu1 %v5068_v29  ;;  %4483 = vmatprep.subr.bf16.mxu0 %v5069_v31  ;;  %v5778_v29 = vld [vmem:[%s6134_s4] sm:$0xff]  }
  0x83   :  { %4507 = vmatprep.subr.bf16.mxu1 %v5070_v32 }
  0x85   :  { %4484 = vmatpush3.bf16.msra.mxu0 %v5069_v31  ;;  %v3779_v31 = vld [vmem:[%s6133_s3] ss:$0 sm:$0xff] }
  0x86   :  { %4508 = vmatpush3.bf16.msra.mxu1 %v5070_v32  ;;  %4485 = vmatprep.subr.bf16.mxu0 %v5071_v33 }
  0x87   :  { %4509 = vmatprep.subr.bf16.mxu1 %v5072_v34 }
  0x89   :  { %4486 = vmatpush3.bf16.msra.mxu0 %v5071_v33 }
  0x8a   :  { %4510 = vmatpush3.bf16.msra.mxu1 %v5072_v34  ;;  %4487 = vmatprep.subr.bf16.mxu0 %v5073_v35 }
  0x8b   :  { %4511 = vmatprep.subr.bf16.mxu1 %v5074_v36 }
  0x8d   :  { %4488 = vmatpush3.bf16.msra.mxu0 %v5073_v35 }
  0x8e   :  { %4512 = vmatpush3.bf16.msra.mxu1 %v5074_v36  ;;  %4489 = vmatprep.subr.bf16.mxu0 %v5075_v37 }
  0x8f   :  { %4513 = vmatprep.subr.bf16.mxu1 %v5076_v38 }
  0x91   :  { %4490 = vmatpush3.bf16.msra.mxu0 %v5075_v37 }
  0x92   :  { %4514 = vmatpush3.bf16.msra.mxu1 %v5076_v38  ;;  %4523 = vmatprep.subr.bf16.mxu0 %v5077_v41 }
  0x93   :  { %4547 = vmatprep.subr.bf16.mxu1 %v5078_v42 }
  0x94   :  { %4492 = vmatmul.mubr.bf16.vlgmr.msra.gmra.mrb[0].mxu0 %v900_v45 }
  0x95   :  { %4516 = vmatmul.mubr.bf16.vlgmr.msra.gmra.mrb[0].mxu1 %v900_v45  ;;  %4524 = vmatpush3.bf16.msra.mxu0 %v5077_v41 }
  0x96   :  { %4548 = vmatpush3.bf16.msra.mxu1 %v5078_v42  ;;  %4525 = vmatprep.subr.bf16.mxu0 %v5079_v46 }
  0x97   :  { %4549 = vmatprep.subr.bf16.mxu1 %v5080_v47  ;;  %4495 = vmatprep.mubr.bf16.mxu0 %v901_v48 }
  0x98   :  { %4519 = vmatprep.mubr.bf16.mxu1 %v901_v48 }
  0x99   :  { %4526 = vmatpush3.bf16.msra.mxu0 %v5079_v46 }
  0x9a   :  { %4550 = vmatpush3.bf16.msra.mxu1 %v5080_v47  ;;  %4527 = vmatprep.subr.bf16.mxu0 %v5081_v51 }
  0x9b   :  { %4551 = vmatprep.subr.bf16.mxu1 %v5082_v52 }
  0x9c   :  { %4496 = vmatmul.mubr.bf16.gmra.mrb[4].mxu0 %v902_v56 }
  0x9d   :  { %4528 = vmatpush3.bf16.msra.mxu0 %v5081_v51  ;;  %4520 = vmatmul.mubr.bf16.gmra.mrb[4].mxu1 %v902_v56 }
  0x9e   :  { %4552 = vmatpush3.bf16.msra.mxu1 %v5082_v52  ;;  %4529 = vmatprep.subr.bf16.mxu0 %v5083_v55 }
  0x9f   :  { %4553 = vmatprep.subr.bf16.mxu1 %v5084_v57  ;;  %4539 = vmatprep.mubr.bf16.mxu0 %v1187_v58 }
  0xa0   :  { %4563 = vmatprep.mubr.bf16.mxu1 %v1187_v58 }
  0xa1   :  { %4530 = vmatpush3.bf16.msra.mxu0 %v5083_v55 }
  0xa2   :  { %4554 = vmatpush3.bf16.msra.mxu1 %v5084_v57  ;;  %4531 = vmatprep.subr.bf16.mxu0 %v5085_v59 }
  0xa3   :  { %4555 = vmatprep.subr.bf16.mxu1 %v5086_v60 }
  0xa5   :  { %4532 = vmatpush3.bf16.msra.mxu0 %v5085_v59 }
  0xa6   :  { %4556 = vmatpush3.bf16.msra.mxu1 %v5086_v60  ;;  %4533 = vmatprep.subr.bf16.mxu0 %v5087_v61 }
  0xa7   :  { %4557 = vmatprep.subr.bf16.mxu1 %v5088_v62 }
  0xa9   :  { %4534 = vmatpush3.bf16.msra.mxu0 %v5087_v61 }
  0xaa   :  { %4558 = vmatpush3.bf16.msra.mxu1 %v5088_v62  ;;  %4535 = vmatprep.subr.bf16.mxu0 %v5089_v63 }
  0xab   :  { %4559 = vmatprep.subr.bf16.mxu1 %v5090_v0 }
  0xad   :  { %4536 = vmatpush3.bf16.msra.mxu0 %v5089_v63 }
  0xae   :  { %4560 = vmatpush3.bf16.msra.mxu1 %v5090_v0  ;;  %4537 = vmatprep.subr.bf16.mxu0 %v5091_v1 }
  0xaf   :  { %4561 = vmatprep.subr.bf16.mxu1 %v5092_v2 }
  0xb1   :  { %4538 = vmatpush3.bf16.msra.mxu0 %v5091_v1 }
  0xb2   :  { %4562 = vmatpush3.bf16.msra.mxu1 %v5092_v2  ;;  %4571 = vmatprep.subr.bf16.mxu0 %v5093_v12 }
  0xb3   :  { %4611 = vmatprep.subr.bf16.mxu1 %v5094_v13 }
  0xb4   :  { %4540 = vmatmul.mubr.bf16.vlgmr.msra.gmra.mrb[0].mxu0 %v1188_v7 }
  0xb5   :  { %4564 = vmatmul.mubr.bf16.vlgmr.msra.gmra.mrb[0].mxu1 %v1188_v7  ;;  %4543 = vmatprep.mubr.bf16.mxu0 %v1189_v8 }
  0xb6   :  { %4567 = vmatprep.mubr.bf16.mxu1 %v1189_v8  ;;  %4572 = vmatpush3.bf16.msra.mxu0 %v5093_v12 }
  0xb7   :  { %4612 = vmatpush3.bf16.msra.mxu1 %v5094_v13  ;;  %4573 = vmatprep.subr.bf16.mxu0 %v5095_v14 }
  0xb8   :  { %4613 = vmatprep.subr.bf16.mxu1 %v5096_v15 }
  0xba   :  { %4574 = vmatpush3.bf16.msra.mxu0 %v5095_v14 }
  0xbb   :  { %4614 = vmatpush3.bf16.msra.mxu1 %v5096_v15  ;;  %4575 = vmatprep.subr.bf16.mxu0 %v5097_v16 }
  0xbc   :  { %4544 = vmatmul.mubr.bf16.gmra.mrb[4].mxu0 %v1190_v11  ;;  %4615 = vmatprep.subr.bf16.mxu1 %v5098_v17 }
  0xbd   :  { %4568 = vmatmul.mubr.bf16.gmra.mrb[4].mxu1 %v1190_v11 }
  0xbe   :  { %4576 = vmatpush3.bf16.msra.mxu0 %v5097_v16 }
  0xbf   :  { %4616 = vmatpush3.bf16.msra.mxu1 %v5098_v17  ;;  %4577 = vmatprep.subr.bf16.mxu0 %v5099_v18 }
  0xc0   :  { %4617 = vmatprep.subr.bf16.mxu1 %v5100_v19 }
  0xc2   :  { %4578 = vmatpush3.bf16.msra.mxu0 %v5099_v18 }
  0xc3   :  { %4618 = vmatpush3.bf16.msra.mxu1 %v5100_v19  ;;  %4579 = vmatprep.subr.bf16.mxu0 %v5101_v20 }
  0xc4   :  { %4619 = vmatprep.subr.bf16.mxu1 %v5102_v21 }
  0xc6   :  { %4580 = vmatpush3.bf16.msra.mxu0 %v5101_v20 }
  0xc7   :  { %4620 = vmatpush3.bf16.msra.mxu1 %v5102_v21  ;;  %4581 = vmatprep.subr.bf16.mxu0 %v5103_v22 }
  0xc8   :  { %4621 = vmatprep.subr.bf16.mxu1 %v5104_v23 }
  0xca   :  { %4582 = vmatpush3.bf16.msra.mxu0 %v5103_v22 }
  0xcb   :  { %4622 = vmatpush3.bf16.msra.mxu1 %v5104_v23  ;;  %4583 = vmatprep.subr.bf16.mxu0 %v5105_v25 }
  0xcc   :  { %4623 = vmatprep.subr.bf16.mxu1 %v5106_v26 }
  0xce   :  { %4584 = vmatpush3.bf16.msra.mxu0 %v5105_v25 }
  0xcf   :  { %4624 = vmatpush3.bf16.msra.mxu1 %v5106_v26  ;;  %4585 = vmatprep.subr.bf16.mxu0 %v5107_v27 }
  0xd0   :  { %4625 = vmatprep.subr.bf16.mxu1 %v5108_v28 }
  0xd2   :  { %4586 = vmatpush3.bf16.msra.mxu0 %v5107_v27 }
  0xd3   :  { %4626 = vmatpush3.bf16.msra.mxu1 %v5108_v28  ;;  %4591 = vmatprep.subr.bf16.mxu0 %v5778_v29 }
  0xd4   :  { %4631 = vmatprep.subr.bf16.mxu1 %v5783_v30 }
 0x187   :  { %v4541_v32 = vpop.f32.mrb[0].mxu0 }
 0x188   :  { %v1476_v33 = vadd.f32 %v4541_v32, %v3779_v31  ;;  %v4565_v34 = vpop.f32.mrb[0].mxu1  ;;  %v1290_v35 = vpop.f32.mrb[1].mxu0 }
 0x189   :  { %v1492_v36 = vadd.f32 %v4565_v34, %v3779_v31  ;;  %v1474_v37 = vadd.f32 %v3779_v31, %v1290_v35  ;;  %v1428_v38 = vpop.f32.mrb[1].mxu1  ;;  %v4542_v39 = vpop.f32.mrb[2].mxu0 }
 0x18a   :  { %v1484_v40 = vmax.f32 %v1476_v33, 0.0  ;;  %v1490_v41 = vadd.f32 %v3779_v31, %v1428_v38  ;;  %v1477_v42 = vadd.f32 %v4542_v39, %v3779_v31  ;;  %v4566_v43 = vpop.f32.mrb[2].mxu1  ;;  %v1293_v44 = vpop.f32.mrb[3].mxu0 }
 0x18b   :  { %v1500_v45 = vmax.f32 %v1492_v36, 0.0  ;;  %v1482_v46 = vmax.f32 %v1474_v37, 0.0  ;;  %v1493_v47 = vadd.f32 %v4566_v43, %v3779_v31  ;;  %v1475_v48 = vadd.f32 %v3779_v31, %v1293_v44  ;;  %v1431_v49 = vpop.f32.mrb[3].mxu1 }
 0x18c   :  { %v1498_v50 = vmax.f32 %v1490_v41, 0.0  ;;  %v1485_v51 = vmax.f32 %v1477_v42, 0.0  ;;  %v1491_v52 = vadd.f32 %v3779_v31, %v1431_v49  ;;  %v5114_v49 = vld [vmem:[%s6135_s5 + $0x10] sm:$0xff]  }
 0x18d   :  { %v1508_v53 = vmax.f32 %v1484_v40, %v1500_v45  ;;  %v1501_v54 = vmax.f32 %v1493_v47, 0.0  ;;  %v1483_v55 = vmax.f32 %v1475_v48, 0.0  ;;  %v5111_v45 = vld [vmem:[%s6134_s4 + $0x8] sm:$0xff]   ;;  %v5113_v48 = vld [vmem:[%s6134_s4 + $0x10] sm:$0xff]  }
 0x18e   :  { %v1506_v56 = vmax.f32 %v1482_v46, %v1498_v50  ;;  %v1499_v57 = vmax.f32 %v1491_v52, 0.0  ;;  %v5112_v46 = vld [vmem:[%s6135_s5 + $0x8] sm:$0xff]   ;;  %v5117_v50 = vld [vmem:[%s6134_s4 + $0x20] sm:$0xff]  }
 0x18f   :  { %1516 = vst [vmem:[#allocation2 + $0x10] sm:$0xff] %v1508_v53  ;;  %v1509_v58 = vmax.f32 %v1485_v51, %v1501_v54  ;;  %v4545_v59 = vpop.f32.mrb[4].mxu0  ;;  %v5118_v51 = vld [vmem:[%s6135_s5 + $0x20] sm:$0xff]   ;;  %v5119_v52 = vld [vmem:[%s6134_s4 + $0x28] sm:$0xff]   ;;  %v5121_v54 = vld [vmem:[%s6134_s4 + $0x30] sm:$0xff]  }
 0x190   :  { %1514 = vst [vmem:[#allocation2] sm:$0xff] %v1506_v56  ;;  %v1507_v60 = vmax.f32 %v1483_v55, %v1499_v57  ;;  %v1480_v61 = vadd.f32 %v4545_v59, %v3779_v31  ;;  %v4569_v62 = vpop.f32.mrb[4].mxu1  ;;  %v1306_v63 = vpop.f32.mrb[5].mxu0  ;;  %v5120_v53 = vld [vmem:[%s6135_s5 + $0x28] sm:$0xff]   ;;  %v5122_v55 = vld [vmem:[%s6135_s5 + $0x30] sm:$0xff]   ;;  %v5123_v56 = vld [vmem:[%s6134_s4 + $0x38] sm:$0xff]  }
 0x191   :  { %1517 = vst [vmem:[#allocation2 + $0x18] sm:$0xff] %v1509_v58  ;;  %v1496_v0 = vadd.f32 %v4569_v62, %v3779_v31  ;;  %v1478_v1 = vadd.f32 %v3779_v31, %v1306_v63  ;;  %v1444_v2 = vpop.f32.mrb[5].mxu1  ;;  %v4546_v3 = vpop.f32.mrb[6].mxu0  ;;  %v5124_v57 = vld [vmem:[%s6135_s5 + $0x38] sm:$0xff]   ;;  %v5125_v58 = vld [vmem:[%s6134_s4 + $0x80] sm:$0xff]  }
 0x192   :  { %1515 = vst [vmem:[#allocation2 + $0x8] sm:$0xff] %v1507_v60  ;;  %v1488_v4 = vmax.f32 %v1480_v61, 0.0  ;;  %v1494_v5 = vadd.f32 %v3779_v31, %v1444_v2  ;;  %v1481_v6 = vadd.f32 %v4546_v3, %v3779_v31  ;;  %v4570_v7 = vpop.f32.mrb[6].mxu1  ;;  %v1309_v8 = vpop.f32.mrb[7].mxu0  ;;  %v5126_v59 = vld [vmem:[%s6135_s5 + $0x80] sm:$0xff]   ;;  %v5129_v2 = vld [vmem:[%s6134_s4 + $0x90] sm:$0xff]  }
 0x193   :  { %v1504_v9 = vmax.f32 %v1496_v0, 0.0  ;;  %v1486_v10 = vmax.f32 %v1478_v1, 0.0  ;;  %v1497_v11 = vadd.f32 %v4570_v7, %v3779_v31  ;;  %v1479_v12 = vadd.f32 %v3779_v31, %v1309_v8  ;;  %v1447_v13 = vpop.f32.mrb[7].mxu1  ;;  %v5127_v0 = vld [vmem:[%s6134_s4 + $0x88] sm:$0xff]   ;;  %v5130_v3 = vld [vmem:[%s6135_s5 + $0x90] sm:$0xff]   ;;  %v5134_v7 = vld [vmem:[%s6135_s5 + $0xa0] sm:$0xff]  }
 0x194   :  { %v1502_v14 = vmax.f32 %v1494_v5, 0.0  ;;  %v1489_v15 = vmax.f32 %v1481_v6, 0.0  ;;  %v1495_v16 = vadd.f32 %v3779_v31, %v1447_v13  ;;  %v5128_v1 = vld [vmem:[%s6135_s5 + $0x88] sm:$0xff]   ;;  %v5132_v5 = vld [vmem:[%s6135_s5 + $0x98] sm:$0xff]   ;;  %v5133_v6 = vld [vmem:[%s6134_s4 + $0xa0] sm:$0xff]  }
 0x195   :  { %v1512_v17 = vmax.f32 %v1488_v4, %v1504_v9  ;;  %v1505_v18 = vmax.f32 %v1497_v11, 0.0  ;;  %v1487_v19 = vmax.f32 %v1479_v12, 0.0  ;;  %v5131_v4 = vld [vmem:[%s6134_s4 + $0x98] sm:$0xff]   ;;  %v5135_v8 = vld [vmem:[%s6134_s4 + $0xa8] sm:$0xff]   ;;  %v5138_v11 = vld [vmem:[%s6135_s5 + $0xb0] sm:$0xff]  }
 0x196   :  { %v1510_v20 = vmax.f32 %v1486_v10, %v1502_v14  ;;  %v1503_v21 = vmax.f32 %v1495_v16, 0.0  ;;  %v5136_v9 = vld [vmem:[%s6135_s5 + $0xa8] sm:$0xff]   ;;  %v5137_v10 = vld [vmem:[%s6134_s4 + $0xb0] sm:$0xff]   ;;  %v5139_v12 = vld [vmem:[%s6134_s4 + $0xb8] sm:$0xff]  }
 0x197   :  { %1520 = vst [vmem:[#allocation2 + $0x30] sm:$0xff] %v1512_v17  ;;  %v1513_v22 = vmax.f32 %v1489_v15, %v1505_v18  ;;  %v5140_v13 = vld [vmem:[%s6135_s5 + $0xb8] sm:$0xff]   ;;  %v5141_v14 = vld [vmem:[%s6134_s4 + $0xc0] sm:$0xff]  }
 0x198   :  { %v1524_v23 = vld [vmem:[#allocation2 + $0x10] ss:$2 sm:$0xff]  ;;  %v1532_v25 = vld [vmem:[#allocation2 + $0x11] ss:$2 sm:$0xff]  ;;  %1518 = vst [vmem:[#allocation2 + $0x20] sm:$0xff] %v1510_v20  ;;  %v1511_v26 = vmax.f32 %v1487_v19, %v1503_v21  ;;  %v5142_v17 = vld [vmem:[%s6135_s5 + $0xc0] sm:$0xff]  }
 0x199   :  { %v1538_v27 = vmax.f32 %v1524_v23, %v1532_v25  ;;  %v1522_v28 = vld [vmem:[#allocation2] ss:$2 sm:$0xff]  ;;  %v1530_v32 = vld [vmem:[#allocation2 + $0x1] ss:$2 sm:$0xff]  ;;  %1521 = vst [vmem:[#allocation2 + $0x38] sm:$0xff] %v1513_v22  ;;  %v5145_v25 = vld [vmem:[%s6134_s4 + $0xd0] sm:$0xff]  }
 0x19a   :  { %v1537_v33 = vmax.f32 %v1522_v28, %v1530_v32  ;;  %1519 = vst [vmem:[#allocation2 + $0x28] sm:$0xff] %v1511_v26  ;;  %v5143_v21 = vld [vmem:[%s6134_s4 + $0xc8] sm:$0xff]   ;;  %v5146_v26 = vld [vmem:[%s6135_s5 + $0xd0] sm:$0xff]   ;;  %v5148_v28 = vld [vmem:[%s6135_s5 + $0xd8] sm:$0xff]  }
 0x19b   :  { %1542 = vst [vmem:[#allocation3 + $0x8] sm:$0xff] %v1538_v27  ;;  %v5144_v23 = vld [vmem:[%s6135_s5 + $0xc8] sm:$0xff]   ;;  %v5149_v32 = vld [vmem:[%s6134_s4 + $0xe0] sm:$0xff]  }
 0x19c   :  { %1541 = vst [vmem:[#allocation3] sm:$0xff] %v1537_v33  ;;  %v1549_v47 = vpack.c.bf16 %v1538_v27, %v1537_v33  ;;  %v5147_v27 = vld [vmem:[%s6134_s4 + $0xd8] sm:$0xff]   ;;  %v5150_v33 = vld [vmem:[%s6135_s5 + $0xe0] sm:$0xff]  }
 0x1a0   :  { %v1528_v31 = vld [vmem:[#allocation2 + $0x30] ss:$2 sm:$0xff]  ;;  %v1536_v34 = vld [vmem:[#allocation2 + $0x31] ss:$2 sm:$0xff] }
 0x1a1   :  { %v5790_v35 = vmax.f32 %v1528_v31, %v1536_v34  ;;  %v1526_v36 = vld [vmem:[#allocation2 + $0x20] ss:$2 sm:$0xff]  ;;  %v1534_v37 = vld [vmem:[#allocation2 + $0x21] ss:$2 sm:$0xff] }
 0x1a2   :  { %v5792_v38 = vmax.f32 %v1526_v36, %v1534_v37  ;;  %v5151_v31 = vld [vmem:[%s6134_s4 + $0xe8] sm:$0xff]   ;;  %v5154_v36 = vld [vmem:[%s6135_s5 + $0xf0] sm:$0xff]   ;;  %v5155_v37 = vld [vmem:[%s6134_s4 + $0xf8] sm:$0xff]  }
 0x1a3   :  { %1544 = vst [vmem:[#allocation3 + $0x18] sm:$0xff] %v5790_v35  ;;  %v1583_v40 = vld [vmem:[#allocation3 + $0x1] sm:$0xff] }
 0x1a4   :  { %1543 = vst [vmem:[#allocation3 + $0x10] sm:$0xff] %v5792_v38  ;;  %v1550_v61 = vpack.c.bf16 %v5790_v35, %v5792_v38  ;;  %v2011_v62 = vld [vmem:[#allocation3 + $0x2] sm:$0xff]  ;;  %v5153_v35 = vld [vmem:[%s6134_s4 + $0xf0] sm:$0xff]   ;;  %v5156_v38 = vld [vmem:[%s6135_s5 + $0xf8] sm:$0xff]  }
 0x1a5   :  { %v2253_v20 = vld [vmem:[#allocation3 + $0x3] sm:$0xff] }
 0x1a6   :  { %v5152_v34 = vld [vmem:[%s6135_s5 + $0xe8] sm:$0xff]  }
 0x1aa   :  { %v1586_v39 = vld [vmem:[#allocation3 + $0x19] sm:$0xff] }
 0x1ab   :  { %v1584_v41 = vld [vmem:[#allocation3 + $0x9] sm:$0xff]  ;;  %v1585_v42 = vld [vmem:[#allocation3 + $0x11] sm:$0xff]  ;;  %v2014_v16 = vld [vmem:[#allocation3 + $0x1a] sm:$0xff] }
 0x1ac   :  { %v1587_v43 = vpack.c.bf16 %v1584_v41, %v1583_v40  ;;  %v1588_v44 = vpack.c.bf16 %v1586_v39, %v1585_v42  ;;  %v2012_v60 = vld [vmem:[#allocation3 + $0xa] sm:$0xff]  ;;  %v2013_v15 = vld [vmem:[#allocation3 + $0x12] sm:$0xff]  ;;  %v5157_v39 = vld [vmem:[%s6134_s4 + $0x100] sm:$0xff]  }
 0x1ad   :  { %v2015_v63 = vpack.c.bf16 %v2012_v60, %v2011_v62  ;;  %v2254_v18 = vld [vmem:[#allocation3 + $0xb] sm:$0xff]  ;;  %v2016_v19 = vpack.c.bf16 %v2014_v16, %v2013_v15  ;;  %v2255_v40 = vld [vmem:[#allocation3 + $0x13] sm:$0xff]  ;;  %v2256_v41 = vld [vmem:[#allocation3 + $0x1b] sm:$0xff] }
 0x1ae   :  { %4587 = vmatprep.mubr.bf16.mxu0 %v1587_v43  ;;  %4627 = vmatprep.mubr.bf16.mxu1 %v1587_v43  ;;  %v2257_v22 = vpack.c.bf16 %v2254_v18, %v2253_v20  ;;  %v5158_v42 = vld [vmem:[%s6135_s5 + $0x100] sm:$0xff]   ;;  %v2496_v43 = vld [vmem:[#allocation3 + $0xc] sm:$0xff] }
 0x1af   :  { %4588 = vmatmul.mubr.bf16.vlgmr.msra.gmra.mrb[8].mxu0 %v1588_v44  ;;  %4628 = vmatmul.mubr.bf16.vlgmr.msra.gmra.mrb[8].mxu1 %v1588_v44  ;;  %v2258_v44 = vpack.c.bf16 %v2256_v41, %v2255_v40  ;;  %v2498_v60 = vld [vmem:[#allocation3 + $0x1c] sm:$0xff] }
 0x1b0   :  { %4592 = vmatpush3.bf16.msra.mxu0 %v5778_v29  ;;  %4632 = vmatpush3.bf16.msra.mxu1 %v5783_v30  ;;  %v5115_v29 = vld [vmem:[%s6134_s4 + $0x18] sm:$0xff]  }
 0x1b1   :  { %4607 = vmatprep.mubr.bf16.mxu0 %v1549_v47  ;;  %4647 = vmatprep.mubr.bf16.mxu1 %v1549_v47  ;;  %v5116_v30 = vld [vmem:[%s6135_s5 + $0x18] sm:$0xff]  }
 0x1b2   :  { %4593 = vmatprep.subr.bf16.mxu0 %v5111_v45  ;;  %4633 = vmatprep.subr.bf16.mxu1 %v5112_v46 }
 0x1b4   :  { %4594 = vmatpush3.bf16.msra.mxu0 %v5111_v45  ;;  %4634 = vmatpush3.bf16.msra.mxu1 %v5112_v46  ;;  %v2495_v45 = vld [vmem:[#allocation3 + $0x4] sm:$0xff] }
 0x1b5   :  { %4595 = vmatprep.subr.bf16.mxu0 %v5113_v48  ;;  %4635 = vmatprep.subr.bf16.mxu1 %v5114_v49  ;;  %v5159_v46 = vld [vmem:[%s6134_s4 + $0x108] sm:$0xff]   ;;  %v2499_v47 = vpack.c.bf16 %v2496_v43, %v2495_v45 }
 0x1b8   :  { %4596 = vmatpush3.bf16.msra.mxu0 %v5113_v48  ;;  %4636 = vmatpush3.bf16.msra.mxu1 %v5114_v49  ;;  %v5160_v48 = vld [vmem:[%s6135_s5 + $0x108] sm:$0xff]   ;;  %v5161_v49 = vld [vmem:[%s6134_s4 + $0x110] sm:$0xff]  }
 0x1b9   :  { %4597 = vmatprep.subr.bf16.mxu0 %v5115_v29  ;;  %4637 = vmatprep.subr.bf16.mxu1 %v5116_v30 }
 0x1bc   :  { %4598 = vmatpush3.bf16.msra.mxu0 %v5115_v29  ;;  %4638 = vmatpush3.bf16.msra.mxu1 %v5116_v30  ;;  %v5162_v29 = vld [vmem:[%s6135_s5 + $0x110] sm:$0xff]   ;;  %v5163_v30 = vld [vmem:[%s6134_s4 + $0x118] sm:$0xff]  }
 0x1bd   :  { %4599 = vmatprep.subr.bf16.mxu0 %v5117_v50  ;;  %4639 = vmatprep.subr.bf16.mxu1 %v5118_v51 }
 0x1c0   :  { %4600 = vmatpush3.bf16.msra.mxu0 %v5117_v50  ;;  %4640 = vmatpush3.bf16.msra.mxu1 %v5118_v51  ;;  %v5164_v50 = vld [vmem:[%s6135_s5 + $0x118] sm:$0xff]   ;;  %v5165_v51 = vld [vmem:[%s6134_s4 + $0x120] sm:$0xff]  }
 0x1c1   :  { %4601 = vmatprep.subr.bf16.mxu0 %v5119_v52  ;;  %4641 = vmatprep.subr.bf16.mxu1 %v5120_v53 }
 0x1c4   :  { %4602 = vmatpush3.bf16.msra.mxu0 %v5119_v52  ;;  %4642 = vmatpush3.bf16.msra.mxu1 %v5120_v53  ;;  %v5166_v52 = vld [vmem:[%s6135_s5 + $0x120] sm:$0xff]   ;;  %v5167_v53 = vld [vmem:[%s6134_s4 + $0x128] sm:$0xff]  }
 0x1c5   :  { %4603 = vmatprep.subr.bf16.mxu0 %v5121_v54  ;;  %4643 = vmatprep.subr.bf16.mxu1 %v5122_v55 }
 0x1c8   :  { %4604 = vmatpush3.bf16.msra.mxu0 %v5121_v54  ;;  %4644 = vmatpush3.bf16.msra.mxu1 %v5122_v55  ;;  %v5168_v54 = vld [vmem:[%s6135_s5 + $0x128] sm:$0xff]   ;;  %v5169_v55 = vld [vmem:[%s6134_s4 + $0x130] sm:$0xff]  }
 0x1c9   :  { %4605 = vmatprep.subr.bf16.mxu0 %v5123_v56  ;;  %4645 = vmatprep.subr.bf16.mxu1 %v5124_v57 }
 0x1cc   :  { %4606 = vmatpush3.bf16.msra.mxu0 %v5123_v56  ;;  %4646 = vmatpush3.bf16.msra.mxu1 %v5124_v57  ;;  %v5170_v56 = vld [vmem:[%s6135_s5 + $0x130] sm:$0xff]   ;;  %v5171_v57 = vld [vmem:[%s6134_s4 + $0x138] sm:$0xff]  }
 0x1cd   :  { %4651 = vmatprep.subr.bf16.mxu0 %v5125_v58  ;;  %4671 = vmatprep.subr.bf16.mxu1 %v5126_v59 }
 0x1cf   :  { %4608 = vmatmul.mubr.bf16.vlgmr.msra.gmra.mrb[8].mxu0 %v1550_v61  ;;  %4648 = vmatmul.mubr.bf16.vlgmr.msra.gmra.mrb[8].mxu1 %v1550_v61  ;;  %v5173_v61 = vld [vmem:[#allocation6 + $0x40] sm:$0xff]  }
 0x1d0   :  { %4652 = vmatpush3.bf16.msra.mxu0 %v5125_v58  ;;  %4667 = vmatprep.mubr.bf16.mxu0 %v2015_v63  ;;  %v5172_v58 = vld [vmem:[%s6135_s5 + $0x138] sm:$0xff]  }
 0x1d1   :  { %4672 = vmatpush3.bf16.msra.mxu1 %v5126_v59  ;;  %4687 = vmatprep.mubr.bf16.mxu1 %v2015_v63  ;;  %v2497_v59 = vld [vmem:[#allocation3 + $0x14] sm:$0xff] }
 0x1d2   :  { %4653 = vmatprep.subr.bf16.mxu0 %v5127_v0  ;;  %4673 = vmatprep.subr.bf16.mxu1 %v5128_v1  ;;  %v2500_v62 = vpack.c.bf16 %v2498_v60, %v2497_v59  ;;  %v5174_v63 = vld [vmem:[#allocation6] sm:$0xff]   ;;  %v5194_v59 = vld [vmem:[#allocation6 + $0xd0] sm:$0xff]   ;;  %v5195_v60 = vld [vmem:[#allocation6 + $0x98] sm:$0xff]  }
 0x1d4   :  { %4654 = vmatpush3.bf16.msra.mxu0 %v5127_v0  ;;  %v5175_v0 = vld [vmem:[#allocation6 + $0x48] sm:$0xff]  }
 0x1d5   :  { %4674 = vmatpush3.bf16.msra.mxu1 %v5128_v1  ;;  %4655 = vmatprep.subr.bf16.mxu0 %v5129_v2  ;;  %v5176_v1 = vld [vmem:[#allocation6 + $0x8] sm:$0xff]  }
 0x1d6   :  { %4675 = vmatprep.subr.bf16.mxu1 %v5130_v3 }
 0x1d8   :  { %4656 = vmatpush3.bf16.msra.mxu0 %v5129_v2  ;;  %v5177_v2 = vld [vmem:[#allocation6 + $0x50] sm:$0xff]  }
 0x1d9   :  { %4676 = vmatpush3.bf16.msra.mxu1 %v5130_v3  ;;  %4657 = vmatprep.subr.bf16.mxu0 %v5131_v4  ;;  %v5178_v3 = vld [vmem:[#allocation6 + $0x10] sm:$0xff]  }
 0x1da   :  { %4677 = vmatprep.subr.bf16.mxu1 %v5132_v5 }
 0x1dc   :  { %4658 = vmatpush3.bf16.msra.mxu0 %v5131_v4  ;;  %v5179_v4 = vld [vmem:[#allocation6 + $0x58] sm:$0xff]  }
 0x1dd   :  { %4678 = vmatpush3.bf16.msra.mxu1 %v5132_v5  ;;  %4659 = vmatprep.subr.bf16.mxu0 %v5133_v6  ;;  %v5180_v5 = vld [vmem:[#allocation6 + $0x18] sm:$0xff]  }
 0x1de   :  { %4679 = vmatprep.subr.bf16.mxu1 %v5134_v7 }
 0x1e0   :  { %4660 = vmatpush3.bf16.msra.mxu0 %v5133_v6  ;;  %v5181_v6 = vld [vmem:[#allocation6 + $0x60] sm:$0xff]  }
 0x1e1   :  { %4680 = vmatpush3.bf16.msra.mxu1 %v5134_v7  ;;  %4661 = vmatprep.subr.bf16.mxu0 %v5135_v8  ;;  %v5182_v7 = vld [vmem:[#allocation6 + $0x20] sm:$0xff]  }
 0x1e2   :  { %4681 = vmatprep.subr.bf16.mxu1 %v5136_v9 }
 0x1e4   :  { %4662 = vmatpush3.bf16.msra.mxu0 %v5135_v8  ;;  %v5183_v8 = vld [vmem:[#allocation6 + $0x68] sm:$0xff]  }
 0x1e5   :  { %4682 = vmatpush3.bf16.msra.mxu1 %v5136_v9  ;;  %4663 = vmatprep.subr.bf16.mxu0 %v5137_v10  ;;  %v5184_v9 = vld [vmem:[#allocation6 + $0x28] sm:$0xff]  }
 0x1e6   :  { %4683 = vmatprep.subr.bf16.mxu1 %v5138_v11 }
 0x1e8   :  { %4664 = vmatpush3.bf16.msra.mxu0 %v5137_v10  ;;  %v5185_v10 = vld [vmem:[#allocation6 + $0x70] sm:$0xff]  }
 0x1e9   :  { %4684 = vmatpush3.bf16.msra.mxu1 %v5138_v11  ;;  %4665 = vmatprep.subr.bf16.mxu0 %v5139_v12  ;;  %v5186_v11 = vld [vmem:[#allocation6 + $0x30] sm:$0xff]  }
 0x1ea   :  { %4685 = vmatprep.subr.bf16.mxu1 %v5140_v13 }
 0x1ec   :  { %4666 = vmatpush3.bf16.msra.mxu0 %v5139_v12  ;;  %v5187_v12 = vld [vmem:[#allocation6 + $0x78] sm:$0xff]  }
 0x1ed   :  { %4686 = vmatpush3.bf16.msra.mxu1 %v5140_v13  ;;  %4691 = vmatprep.subr.bf16.mxu0 %v5141_v14  ;;  %v5188_v13 = vld [vmem:[#allocation6 + $0x38] sm:$0xff]  }
 0x1ee   :  { %4711 = vmatprep.subr.bf16.mxu1 %v5142_v17 }
 0x1ef   :  { %4668 = vmatmul.mubr.bf16.vlgmr.msra.gmra.mrb[8].mxu0 %v2016_v19 }
 0x1f0   :  { %4688 = vmatmul.mubr.bf16.vlgmr.msra.gmra.mrb[8].mxu1 %v2016_v19  ;;  %4692 = vmatpush3.bf16.msra.mxu0 %v5141_v14  ;;  %v3988_v14 = vld [vmem:[%s6136_s6] ss:$0 sm:$0xff] }
 0x1f1   :  { %4707 = vmatprep.mubr.bf16.mxu0 %v2257_v22  ;;  %4712 = vmatpush3.bf16.msra.mxu1 %v5142_v17 }
 0x1f2   :  { %4727 = vmatprep.mubr.bf16.mxu1 %v2257_v22  ;;  %4693 = vmatprep.subr.bf16.mxu0 %v5143_v21 }
 0x1f3   :  { %4713 = vmatprep.subr.bf16.mxu1 %v5144_v23 }
 0x1f4   :  { %4694 = vmatpush3.bf16.msra.mxu0 %v5143_v21 }
 0x1f5   :  { %4714 = vmatpush3.bf16.msra.mxu1 %v5144_v23  ;;  %4695 = vmatprep.subr.bf16.mxu0 %v5145_v25 }
 0x1f6   :  { %4715 = vmatprep.subr.bf16.mxu1 %v5146_v26 }
 0x1f8   :  { %4696 = vmatpush3.bf16.msra.mxu0 %v5145_v25 }
 0x1f9   :  { %4716 = vmatpush3.bf16.msra.mxu1 %v5146_v26  ;;  %4697 = vmatprep.subr.bf16.mxu0 %v5147_v27 }
 0x1fa   :  { %4717 = vmatprep.subr.bf16.mxu1 %v5148_v28 }
 0x1fc   :  { %4698 = vmatpush3.bf16.msra.mxu0 %v5147_v27 }
 0x1fd   :  { %4718 = vmatpush3.bf16.msra.mxu1 %v5148_v28  ;;  %4699 = vmatprep.subr.bf16.mxu0 %v5149_v32 }
 0x1fe   :  { %4719 = vmatprep.subr.bf16.mxu1 %v5150_v33 }
 0x200   :  { %4700 = vmatpush3.bf16.msra.mxu0 %v5149_v32 }
 0x201   :  { %4720 = vmatpush3.bf16.msra.mxu1 %v5150_v33  ;;  %4701 = vmatprep.subr.bf16.mxu0 %v5151_v31 }
 0x202   :  { %4721 = vmatprep.subr.bf16.mxu1 %v5152_v34 }
 0x204   :  { %4702 = vmatpush3.bf16.msra.mxu0 %v5151_v31 }
 0x205   :  { %4722 = vmatpush3.bf16.msra.mxu1 %v5152_v34  ;;  %4703 = vmatprep.subr.bf16.mxu0 %v5153_v35 }
 0x206   :  { %4723 = vmatprep.subr.bf16.mxu1 %v5154_v36 }
 0x208   :  { %4704 = vmatpush3.bf16.msra.mxu0 %v5153_v35 }
 0x209   :  { %4724 = vmatpush3.bf16.msra.mxu1 %v5154_v36  ;;  %4705 = vmatprep.subr.bf16.mxu0 %v5155_v37 }
 0x20a   :  { %4725 = vmatprep.subr.bf16.mxu1 %v5156_v38 }
 0x20c   :  { %4706 = vmatpush3.bf16.msra.mxu0 %v5155_v37 }
 0x20d   :  { %4726 = vmatpush3.bf16.msra.mxu1 %v5156_v38  ;;  %4731 = vmatprep.subr.bf16.mxu0 %v5157_v39 }
 0x20e   :  { %4751 = vmatprep.subr.bf16.mxu1 %v5158_v42 }
 0x20f   :  { %4708 = vmatmul.mubr.bf16.vlgmr.msra.gmra.mrb[8].mxu0 %v2258_v44 }
 0x210   :  { %4728 = vmatmul.mubr.bf16.vlgmr.msra.gmra.mrb[8].mxu1 %v2258_v44  ;;  %4732 = vmatpush3.bf16.msra.mxu0 %v5157_v39 }
 0x211   :  { %4747 = vmatprep.mubr.bf16.mxu0 %v2499_v47  ;;  %4752 = vmatpush3.bf16.msra.mxu1 %v5158_v42 }
 0x212   :  { %4767 = vmatprep.mubr.bf16.mxu1 %v2499_v47  ;;  %4733 = vmatprep.subr.bf16.mxu0 %v5159_v46 }
 0x213   :  { %4753 = vmatprep.subr.bf16.mxu1 %v5160_v48 }
 0x214   :  { %4734 = vmatpush3.bf16.msra.mxu0 %v5159_v46 }
 0x215   :  { %4754 = vmatpush3.bf16.msra.mxu1 %v5160_v48  ;;  %4735 = vmatprep.subr.bf16.mxu0 %v5161_v49 }
 0x216   :  { %4755 = vmatprep.subr.bf16.mxu1 %v5162_v29 }
 0x218   :  { %4736 = vmatpush3.bf16.msra.mxu0 %v5161_v49 }
 0x219   :  { %4756 = vmatpush3.bf16.msra.mxu1 %v5162_v29  ;;  %4737 = vmatprep.subr.bf16.mxu0 %v5163_v30 }
 0x21a   :  { %4757 = vmatprep.subr.bf16.mxu1 %v5164_v50 }
 0x21c   :  { %4738 = vmatpush3.bf16.msra.mxu0 %v5163_v30 }
 0x21d   :  { %4758 = vmatpush3.bf16.msra.mxu1 %v5164_v50  ;;  %4739 = vmatprep.subr.bf16.mxu0 %v5165_v51  ;;  %v5189_v50 = vld [vmem:[#allocation6 + $0x80] sm:$0xff]  }
 0x21e   :  { %4759 = vmatprep.subr.bf16.mxu1 %v5166_v52 }
 0x220   :  { %4740 = vmatpush3.bf16.msra.mxu0 %v5165_v51  ;;  %v5190_v51 = vld [vmem:[#allocation6 + $0xc0] sm:$0xff]  }
 0x221   :  { %4760 = vmatpush3.bf16.msra.mxu1 %v5166_v52  ;;  %4741 = vmatprep.subr.bf16.mxu0 %v5167_v53 }
 0x222   :  { %4761 = vmatprep.subr.bf16.mxu1 %v5168_v54 }
 0x224   :  { %4742 = vmatpush3.bf16.msra.mxu0 %v5167_v53 }
 0x225   :  { %4762 = vmatpush3.bf16.msra.mxu1 %v5168_v54  ;;  %4743 = vmatprep.subr.bf16.mxu0 %v5169_v55 }
 0x226   :  { %4763 = vmatprep.subr.bf16.mxu1 %v5170_v56 }
 0x228   :  { %4744 = vmatpush3.bf16.msra.mxu0 %v5169_v55 }
 0x229   :  { %4764 = vmatpush3.bf16.msra.mxu1 %v5170_v56  ;;  %4745 = vmatprep.subr.bf16.mxu0 %v5171_v57  ;;  %v5191_v56 = vld [vmem:[#allocation6 + $0x88] sm:$0xff]  }
 0x22a   :  { %4765 = vmatprep.subr.bf16.mxu1 %v5172_v58 }
 0x22c   :  { %4746 = vmatpush3.bf16.msra.mxu0 %v5171_v57  ;;  %v5192_v57 = vld [vmem:[#allocation6 + $0xc8] sm:$0xff]  }
 0x22d   :  { %4766 = vmatpush3.bf16.msra.mxu1 %v5172_v58  ;;  %4771 = vmatprep.subr.bf16.mxu0 %v5281_v24  ;;  %v5193_v58 = vld [vmem:[#allocation6 + $0x90] sm:$0xff]  }
 0x22e   :  { %4791 = vmatprep.subr.bf16.mxu1 %v5281_v24 }
 0x22f   :  { %4748 = vmatmul.mubr.bf16.vlgmr.msra.gmra.mrb[8].mxu0 %v2500_v62 }
 0x230   :  { %4768 = vmatmul.mubr.bf16.vlgmr.msra.gmra.mrb[8].mxu1 %v2500_v62  ;;  %4772 = vmatpush3.bf16.msra.mxu0 %v5173_v61  ;;  %v5196_v61 = vld [vmem:[#allocation6 + $0xd8] sm:$0xff]   ;;  %v5197_v62 = vld [vmem:[#allocation6 + $0xa0] sm:$0xff]  }
 0x231   :  { %4792 = vmatpush3.bf16.msra.mxu1 %v5174_v63  ;;  %4773 = vmatprep.subr.bf16.mxu0 %v5281_v24  ;;  %v5198_v63 = vld [vmem:[#allocation6 + $0xe0] sm:$0xff]  }
 0x232   :  { %4793 = vmatprep.subr.bf16.mxu1 %v5281_v24  ;;  %4787 = vmatprep.mubr.msk.bf16.mxu0 %vm5282_vm0, %v5281_v24 }
 0x233   :  { %4807 = vmatprep.mubr.msk.bf16.mxu1 %vm5282_vm0, %v5281_v24 }
 0x234   :  { %4774 = vmatpush3.bf16.msra.mxu0 %v5175_v0  ;;  %v5199_v0 = vld [vmem:[#allocation6 + $0xa8] sm:$0xff]  }
 0x235   :  { %4794 = vmatpush3.bf16.msra.mxu1 %v5176_v1  ;;  %4775 = vmatprep.subr.bf16.mxu0 %v5281_v24  ;;  %v5200_v1 = vld [vmem:[#allocation6 + $0xe8] sm:$0xff]  }
 0x236   :  { %4795 = vmatprep.subr.bf16.mxu1 %v5281_v24 }
 0x238   :  { %4776 = vmatpush3.bf16.msra.mxu0 %v5177_v2  ;;  %v5201_v2 = vld [vmem:[#allocation6 + $0xb0] sm:$0xff]  }
 0x239   :  { %4796 = vmatpush3.bf16.msra.mxu1 %v5178_v3  ;;  %4777 = vmatprep.subr.bf16.mxu0 %v5281_v24  ;;  %v5202_v3 = vld [vmem:[#allocation6 + $0xf0] sm:$0xff]  }
 0x23a   :  { %4797 = vmatprep.subr.bf16.mxu1 %v5281_v24 }
 0x23c   :  { %4778 = vmatpush3.bf16.msra.mxu0 %v5179_v4  ;;  %v5203_v4 = vld [vmem:[#allocation6 + $0xb8] sm:$0xff]  }
 0x23d   :  { %4798 = vmatpush3.bf16.msra.mxu1 %v5180_v5  ;;  %4779 = vmatprep.subr.bf16.mxu0 %v5281_v24  ;;  %v5204_v5 = vld [vmem:[#allocation6 + $0xf8] sm:$0xff]  }
 0x23e   :  { %4799 = vmatprep.subr.bf16.mxu1 %v5281_v24 }
 0x240   :  { %4780 = vmatpush3.bf16.msra.mxu0 %v5181_v6 }
 0x241   :  { %4800 = vmatpush3.bf16.msra.mxu1 %v5182_v7  ;;  %4781 = vmatprep.subr.bf16.mxu0 %v5281_v24 }
 0x242   :  { %4801 = vmatprep.subr.bf16.mxu1 %v5281_v24 }
 0x244   :  { %4782 = vmatpush3.bf16.msra.mxu0 %v5183_v8  ;;  %v5205_v8 = vld [vmem:[#allocation6 + $0x100] sm:$0xff]  }
 0x245   :  { %4802 = vmatpush3.bf16.msra.mxu1 %v5184_v9  ;;  %4783 = vmatprep.subr.bf16.mxu0 %v5281_v24 }
 0x246   :  { %4803 = vmatprep.subr.bf16.mxu1 %v5281_v24 }
 0x248   :  { %4784 = vmatpush3.bf16.msra.mxu0 %v5185_v10 }
 0x249   :  { %4804 = vmatpush3.bf16.msra.mxu1 %v5186_v11  ;;  %4785 = vmatprep.subr.bf16.mxu0 %v5281_v24  ;;  %v5206_v11 = vld [vmem:[#allocation6 + $0x108] sm:$0xff]  }
 0x24a   :  { %4805 = vmatprep.subr.bf16.mxu1 %v5281_v24 }
 0x24c   :  { %4786 = vmatpush3.bf16.msra.mxu0 %v5187_v12  ;;  %v5207_v12 = vld [vmem:[#allocation6 + $0x110] sm:$0xff]  }
 0x24d   :  { %4806 = vmatpush3.bf16.msra.mxu1 %v5188_v13  ;;  %4811 = vmatprep.subr.bf16.mxu0 %v5281_v24  ;;  %v5208_v13 = vld [vmem:[#allocation6 + $0x118] sm:$0xff]  }
 0x24e   :  { %4831 = vmatprep.subr.bf16.mxu1 %v5281_v24 }
 0x302   :  { %v4749_v15 = vpop.f32.mrb[8].mxu0 }
 0x303   :  { %v2746_v16 = vadd.f32 %v4749_v15, %v3988_v14  ;;  %v4769_v17 = vpop.f32.mrb[8].mxu1  ;;  %v2600_v18 = vpop.f32.mrb[9].mxu0  ;;  %v5210_v15 = vld [vmem:[#allocation6 + $0x128] sm:$0xff]  }
 0x304   :  { %v2754_v19 = vadd.f32 %v4769_v17, %v3988_v14  ;;  %v2744_v20 = vadd.f32 %v3988_v14, %v2600_v18  ;;  %v2718_v21 = vpop.f32.mrb[9].mxu1  ;;  %v4750_v22 = vpop.f32.mrb[10].mxu0  ;;  %v5212_v17 = vld [vmem:[#allocation6 + $0x138] sm:$0xff]  }
 0x305   :  { %v2750_v23 = vmax.f32 %v2746_v16, 0.0  ;;  %v2752_v25 = vadd.f32 %v3988_v14, %v2718_v21  ;;  %v2747_v26 = vadd.f32 %v4750_v22, %v3988_v14  ;;  %v4770_v27 = vpop.f32.mrb[10].mxu1  ;;  %v2603_v28 = vpop.f32.mrb[11].mxu0  ;;  %v5211_v16 = vld [vmem:[#allocation6 + $0x130] sm:$0xff]   ;;  %v5213_v21 = vld [vmem:[%s6139_s9] sm:$0xff]   ;;  %v5215_v22 = vld [vmem:[%s6139_s9 + $0x10] sm:$0xff]  }
 0x306   :  { %v2758_v32 = vmax.f32 %v2754_v19, 0.0  ;;  %v2748_v33 = vmax.f32 %v2744_v20, 0.0  ;;  %v2755_v31 = vadd.f32 %v4770_v27, %v3988_v14  ;;  %v2745_v34 = vadd.f32 %v3988_v14, %v2603_v28  ;;  %v2721_v35 = vpop.f32.mrb[11].mxu1  ;;  %v6042_v20 = vld [vmem:[#allocation3 + $0x20] sm:$0xff]  ;;  %v5219_v27 = vld [vmem:[%s6139_s9 + $0x30] sm:$0xff]   ;;  %v5220_v28 = vld [vmem:[%s6139_s9 + $0x38] sm:$0xff]  }
 0x307   :  { %v2756_v36 = vmax.f32 %v2752_v25, 0.0  ;;  %v2751_v37 = vmax.f32 %v2747_v26, 0.0  ;;  %v2753_v38 = vadd.f32 %v3988_v14, %v2721_v35  ;;  %v5209_v14 = vld [vmem:[#allocation6 + $0x120] sm:$0xff]   ;;  %v5217_v25 = vld [vmem:[%s6139_s9 + $0x20] sm:$0xff]   ;;  %v5218_v26 = vld [vmem:[%s6139_s9 + $0x28] sm:$0xff]  }
 0x308   :  { %v2762_v39 = vmax.f32 %v2750_v23, %v2758_v32  ;;  %v2759_v40 = vmax.f32 %v2755_v31, 0.0  ;;  %v2749_v41 = vmax.f32 %v2745_v34, 0.0  ;;  %v5216_v23 = vld [vmem:[%s6139_s9 + $0x18] sm:$0xff]   ;;  %v5221_v32 = vld [vmem:[%s6141_s11] sm:$0xff]   ;;  %v5223_v31 = vld [vmem:[%s6141_s11 + $0x10] sm:$0xff]  }
 0x309   :  { %v2760_v42 = vmax.f32 %v2748_v33, %v2756_v36  ;;  %v2757_v43 = vmax.f32 %v2753_v38, 0.0  ;;  %v5222_v33 = vld [vmem:[%s6141_s11 + $0x8] sm:$0xff]   ;;  %v5224_v34 = vld [vmem:[%s6141_s11 + $0x18] sm:$0xff]   ;;  %v5225_v35 = vld [vmem:[%s6141_s11 + $0x20] sm:$0xff]  }
 0x30a   :  { %2766 = vst [vmem:[#allocation4 + $0x10] sm:$0xff] %v2762_v39  ;;  %v2763_v44 = vmax.f32 %v2751_v37, %v2759_v40  ;;  %v5226_v36 = vld [vmem:[%s6141_s11 + $0x28] sm:$0xff]  }
 0x30b   :  { %2764 = vst [vmem:[#allocation4] sm:$0xff] %v2760_v42  ;;  %v2761_v45 = vmax.f32 %v2749_v41, %v2757_v43 }
 0x30c   :  { %2767 = vst [vmem:[#allocation4 + $0x18] sm:$0xff] %v2763_v44 }
 0x30d   :  { %2765 = vst [vmem:[#allocation4 + $0x8] sm:$0xff] %v2761_v45 }
 0x313   :  { %v2770_v46 = vld [vmem:[#allocation4 + $0x10] ss:$2 sm:$0xff]  ;;  %v2774_v47 = vld [vmem:[#allocation4 + $0x11] ss:$2 sm:$0xff] }
 0x314   :  { %v2776_v48 = vmax.f32 %v2770_v46, %v2774_v47  ;;  %v2768_v49 = vld [vmem:[#allocation4] ss:$2 sm:$0xff]  ;;  %v2772_v29 = vld [vmem:[#allocation4 + $0x1] ss:$2 sm:$0xff] }
 0x315   :  { %v2775_v30 = vmax.f32 %v2768_v49, %v2772_v29 }
 0x316   :  { %2778 = vst [vmem:[#allocation5 + $0x8] sm:$0xff] %v2776_v48 }
 0x317   :  { %2777 = vst [vmem:[#allocation5] sm:$0xff] %v2775_v30 }
 0x31e   :  { %v2798_v52 = vld [vmem:[#allocation5 + $0x1] ss:$8 sm:$0x3]  ;;  %v2779_v53 = vld [vmem:[#allocation5] ss:$8 sm:$0x3] }
 0x31f   :  { %v2799_v54 = vpack.c.bf16 %v2798_v52, %v2798_v52  ;;  %v2780_v55 = vpack.c.bf16 %v2779_v53, %v2779_v53  ;;  %v2994_v6 = vld [vmem:[#allocation5 + $0x2] ss:$8 sm:$0x3]  ;;  %v3103_v7 = vld [vmem:[#allocation5 + $0x3] ss:$8 sm:$0x3] }
 0x320   :  { %v2995_v9 = vpack.c.bf16 %v2994_v6, %v2994_v6  ;;  %v3104_v10 = vpack.c.bf16 %v3103_v7, %v3103_v7  ;;  %v3212_v18 = vld [vmem:[#allocation5 + $0x4] ss:$8 sm:$0x3] }
 0x321   :  { %4788 = vmatmul.mubr.bf16.vlgmr.msra.gmra.mrb[12].mxu0 %v2799_v54  ;;  %4808 = vmatmul.mubr.bf16.vlgmr.msra.gmra.mrb[12].mxu1 %v2780_v55  ;;  %v3213_v19 = vpack.c.bf16 %v3212_v18, %v3212_v18  ;;  %v4029_v55 = vld [vmem:[%s6138_s8] ss:$0 sm:$0xff] }
 0x322   :  { %4812 = vmatpush3.bf16.msra.mxu0 %v5189_v50  ;;  %4832 = vmatpush3.bf16.msra.mxu1 %v5190_v51 }
 0x323   :  { %4813 = vmatprep.subr.bf16.mxu0 %v5281_v24  ;;  %4833 = vmatprep.subr.bf16.mxu1 %v5281_v24 }
 0x324   :  { %4827 = vmatprep.mubr.msk.bf16.mxu0 %vm5282_vm0, %v5281_v24  ;;  %4847 = vmatprep.mubr.msk.bf16.mxu1 %vm5282_vm0, %v5281_v24 }
 0x326   :  { %4814 = vmatpush3.bf16.msra.mxu0 %v5191_v56  ;;  %4834 = vmatpush3.bf16.msra.mxu1 %v5192_v57 }
 0x327   :  { %4815 = vmatprep.subr.bf16.mxu0 %v5281_v24  ;;  %4835 = vmatprep.subr.bf16.mxu1 %v5281_v24 }
 0x32a   :  { %4816 = vmatpush3.bf16.msra.mxu0 %v5193_v58  ;;  %4836 = vmatpush3.bf16.msra.mxu1 %v5194_v59 }
 0x32b   :  { %4817 = vmatprep.subr.bf16.mxu0 %v5281_v24  ;;  %4837 = vmatprep.subr.bf16.mxu1 %v5281_v24 }
 0x32e   :  { %4818 = vmatpush3.bf16.msra.mxu0 %v5195_v60  ;;  %4838 = vmatpush3.bf16.msra.mxu1 %v5196_v61 }
 0x32f   :  { %4819 = vmatprep.subr.bf16.mxu0 %v5281_v24  ;;  %4839 = vmatprep.subr.bf16.mxu1 %v5281_v24 }
 0x332   :  { %4820 = vmatpush3.bf16.msra.mxu0 %v5197_v62  ;;  %4840 = vmatpush3.bf16.msra.mxu1 %v5198_v63  ;;  %v5227_v63 = vld [vmem:[%s6141_s11 + $0x30] sm:$0xff]  }
 0x333   :  { %4821 = vmatprep.subr.bf16.mxu0 %v5281_v24  ;;  %4841 = vmatprep.subr.bf16.mxu1 %v5281_v24 }
 0x336   :  { %4822 = vmatpush3.bf16.msra.mxu0 %v5199_v0  ;;  %4842 = vmatpush3.bf16.msra.mxu1 %v5200_v1  ;;  %v5228_v0 = vld [vmem:[%s6141_s11 + $0x38] sm:$0xff]   ;;  %v4030_v1 = vld [vmem:[%s6140_s10] ss:$0 sm:$0xff]  ;;  %s5252_s10 = scalar_lea.vmem %s3563_s24, 32 }
 0x337   :  { %4823 = vmatprep.subr.bf16.mxu0 %v5281_v24  ;;  %4843 = vmatprep.subr.bf16.mxu1 %v5281_v24  ;;  %p5253_p8 = scmp.ne.s32.totalorder %s3563_s24, %s5252_s10  ;;  %p5258_p10 = scmp.lt.s32.totalorder %s5252_s10, %s5252_s10 }
 0x339   :  { %p5259_p11 = por %p5258_p10, %p5257_p9 }
 0x33a   :  { %4824 = vmatpush3.bf16.msra.mxu0 %v5201_v2  ;;  %4844 = vmatpush3.bf16.msra.mxu1 %v5202_v3 }
 0x33b   :  { %4825 = vmatprep.subr.bf16.mxu0 %v5281_v24  ;;  %4845 = vmatprep.subr.bf16.mxu1 %v5281_v24  ;;  %p5260_p12 = pnand %p5259_p11, %p5253_p8 }
 0x33e   :  { %4826 = vmatpush3.bf16.msra.mxu0 %v5203_v4  ;;  %4846 = vmatpush3.bf16.msra.mxu1 %v5204_v5 }
 0x33f   :  { %4851 = vmatprep.subr.bf16.mxu0 %v5281_v24  ;;  %4871 = vmatprep.subr.bf16.mxu1 %v5281_v24 }
 0x341   :  { %4828 = vmatmul.mubr.bf16.vlgmr.msra.gmra.mrb[16].mxu0 %v2995_v9  ;;  %4848 = vmatmul.mubr.bf16.vlgmr.msra.gmra.mrb[16].mxu1 %v3104_v10  ;;  %v4039_v9 = vld [vmem:[%s6142_s12] ss:$0 sm:$0xff] }
 0x342   :  { %4852 = vmatpush3.bf16.msra.mxu0 %v5205_v8  ;;  %4867 = vmatprep.mubr.msk.bf16.mxu0 %vm5282_vm0, %v5281_v24 }
 0x343   :  { %4853 = vmatprep.subr.bf16.mxu0 %v5281_v24  ;;  %4887 = vmatprep.mubr.msk.bf16.mxu1 %vm5282_vm0, %v5281_v24 }
 0x344   :  { %4872 = vmatpush3.bf16.msra.mxu1 %v5213_v21 }
 0x345   :  { %4873 = vmatprep.subr.bf16.mxu1 %v6042_v20 }
 0x346   :  { %4854 = vmatpush3.bf16.msra.mxu0 %v5206_v11 }
 0x347   :  { %4855 = vmatprep.subr.bf16.mxu0 %v5281_v24 }
 0x34a   :  { %4856 = vmatpush3.bf16.msra.mxu0 %v5207_v12 }
 0x34b   :  { %4857 = vmatprep.subr.bf16.mxu0 %v5281_v24 }
 0x34e   :  { %4858 = vmatpush3.bf16.msra.mxu0 %v5208_v13 }
 0x34f   :  { %4859 = vmatprep.subr.bf16.mxu0 %v5281_v24 }
 0x352   :  { %4860 = vmatpush3.bf16.msra.mxu0 %v5209_v14 }
 0x353   :  { %4861 = vmatprep.subr.bf16.mxu0 %v5281_v24 }
 0x356   :  { %4862 = vmatpush3.bf16.msra.mxu0 %v5210_v15 }
 0x357   :  { %4863 = vmatprep.subr.bf16.mxu0 %v5281_v24 }
 0x35a   :  { %4864 = vmatpush3.bf16.msra.mxu0 %v5211_v16 }
 0x35b   :  { %4865 = vmatprep.subr.bf16.mxu0 %v5281_v24  ;;  %v5214_v24 = vld [vmem:[%s6139_s9 + $0x8] sm:$0xff]  }
 0x35c   :  { %4874 = vmatpush3.bf16.msra.mxu1 %v5214_v24 }
 0x35d   :  { %4875 = vmatprep.subr.bf16.mxu1 %v6042_v20 }
 0x35e   :  { %4866 = vmatpush3.bf16.msra.mxu0 %v5212_v17 }
 0x35f   :  { %4891 = vmatprep.subr.bf16.mxu0 %v6042_v20 }
 0x360   :  { %4876 = vmatpush3.bf16.msra.mxu1 %v5215_v22 }
 0x361   :  { %4868 = vmatmul.mubr.bf16.vlgmr.msra.gmra.mrb[20].mxu0 %v3213_v19  ;;  %4877 = vmatprep.subr.bf16.mxu1 %v6042_v20 }
 0x362   :  { %4907 = vmatprep.mubr.msk.bf16.mxu0 %vm5282_vm0, %v6042_v20  ;;  %4892 = vmatpush3.bf16.msra.mxu0 %v5221_v32 }
 0x363   :  { %4893 = vmatprep.subr.bf16.mxu0 %v6042_v20 }
 0x364   :  { %4878 = vmatpush3.bf16.msra.mxu1 %v5216_v23 }
 0x365   :  { %4879 = vmatprep.subr.bf16.mxu1 %v6042_v20 }
 0x366   :  { %4894 = vmatpush3.bf16.msra.mxu0 %v5222_v33 }
 0x367   :  { %4895 = vmatprep.subr.bf16.mxu0 %v6042_v20 }
 0x368   :  { %4880 = vmatpush3.bf16.msra.mxu1 %v5217_v25 }
 0x369   :  { %4881 = vmatprep.subr.bf16.mxu1 %v6042_v20 }
 0x36a   :  { %4896 = vmatpush3.bf16.msra.mxu0 %v5223_v31 }
 0x36b   :  { %4897 = vmatprep.subr.bf16.mxu0 %v6042_v20 }
 0x36c   :  { %4882 = vmatpush3.bf16.msra.mxu1 %v5218_v26 }
 0x36d   :  { %4883 = vmatprep.subr.bf16.mxu1 %v6042_v20 }
 0x36e   :  { %4898 = vmatpush3.bf16.msra.mxu0 %v5224_v34 }
 0x36f   :  { %4899 = vmatprep.subr.bf16.mxu0 %v6042_v20 }
 0x370   :  { %4884 = vmatpush3.bf16.msra.mxu1 %v5219_v27 }
 0x371   :  { %4885 = vmatprep.subr.bf16.mxu1 %v6042_v20 }
 0x372   :  { %4900 = vmatpush3.bf16.msra.mxu0 %v5225_v35 }
 0x373   :  { %4901 = vmatprep.subr.bf16.mxu0 %v6042_v20 }
 0x374   :  { %4886 = vmatpush3.bf16.msra.mxu1 %v5220_v28 }
 0x376   :  { %4902 = vmatpush3.bf16.msra.mxu0 %v5226_v36 }
 0x377   :  { %4903 = vmatprep.subr.bf16.mxu0 %v6042_v20 }
 0x37a   :  { %4904 = vmatpush3.bf16.msra.mxu0 %v5227_v63 }
 0x37b   :  { %4905 = vmatprep.subr.bf16.mxu0 %v6042_v20 }
 0x37e   :  { %4906 = vmatpush3.bf16.msra.mxu0 %v5228_v0 }
 0x3f4   :  { %v2899_v37 = vpop.f32.mrb[12].mxu0  ;;  %v2987_v38 = vpop.f32.mrb[12].mxu1 }
 0x3f5   :  { %v2988_v39 = vadd.f32 %v2987_v38, %v2899_v37  ;;  %v4789_v40 = vpop.f32.mrb[13].mxu0  ;;  %v4809_v41 = vpop.f32.mrb[13].mxu1 }
 0x3f6   :  { %v2902_v42 = vpop.f32.mrb[14].mxu0  ;;  %v2990_v43 = vpop.f32.mrb[14].mxu1 }
 0x3f7   :  { %v4790_v44 = vpop.f32.mrb[15].mxu0  ;;  %v4810_v45 = vpop.f32.mrb[15].mxu1 }
 0x414   :  { %v3095_v46 = vpop.f32.mrb[16].mxu0  ;;  %v3204_v47 = vpop.f32.mrb[16].mxu1 }
 0x415   :  { %v3101_v48 = vadd.f32 %v3095_v46, %v2988_v39  ;;  %v4829_v49 = vpop.f32.mrb[17].mxu0  ;;  %v4849_v29 = vpop.f32.mrb[17].mxu1 }
 0x416   :  { %v3098_v30 = vpop.f32.mrb[18].mxu0  ;;  %v3207_v50 = vpop.f32.mrb[18].mxu1 }
 0x417   :  { %v3210_v51 = vadd.f32 %v3204_v47, %v3101_v48  ;;  %v4830_v52 = vpop.f32.mrb[19].mxu0  ;;  %v4850_v53 = vpop.f32.mrb[19].mxu1 }
 0x434   :  { %v3313_v54 = vpop.f32.mrb[20].mxu0 }
 0x435   :  { %v3319_v56 = vadd.f32 %v3313_v54, %v3210_v51  ;;  %v4869_v57 = vpop.f32.mrb[21].mxu0 }
 0x436   :  { %v3316_v58 = vpop.f32.mrb[22].mxu0 }
 0x437   :  { %v3327_v59 = vadd.f32 %v4029_v55, %v3319_v56  ;;  %v4870_v60 = vpop.f32.mrb[23].mxu0 }
 0x439   :  { %v3328_v61 = vmax.f32 %v3327_v59, 0.0 }
 0x43b   :  { %v3329_v62 = vpack.c.bf16 %v3328_v61, %v3328_v61 }
 0x43d   :  { %4888 = vmatmul.mubr.bf16.vlgmr.msra.gmra.mrb[20].mxu1 %v3329_v62 }
 0x510   :  { %v3435_v2 = vpop.f32.mrb[20].mxu1 }
 0x511   :  { %v3436_v3 = vadd.f32 %v4030_v1, %v3435_v2  ;;  %v4889_v4 = vpop.f32.mrb[21].mxu1 }
 0x512   :  { %v3438_v5 = vpop.f32.mrb[22].mxu1 }
 0x513   :  { %v3441_v6 = vmax.f32 %v3436_v3, 0.0  ;;  %v4890_v7 = vpop.f32.mrb[23].mxu1 }
 0x515   :  { %v3442_v8 = vpack.c.bf16 %v3441_v6, %v3441_v6 }
 0x517   :  { %4908 = vmatmul.mubr.bf16.vlgmr.msra.gmra.mrb[24].mxu0 %v3442_v8 }
 0x5ea   :  { %v3548_v10 = vpop.f32.mrb[24].mxu0 }
 0x5eb   :  { %v3549_v11 = vadd.f32 %v4039_v9, %v3548_v10  ;;  %v4909_v12 = vpop.f32.mrb[25].mxu0 }
 0x5ec   :  { %v3551_v13 = vpop.f32.mrb[26].mxu0 }
 0x5ed   :  { %v4910_v14 = vpop.f32.mrb[27].mxu0  ;;  %3555 = vst.msk [vmem:[#allocation9] sm:$0x3] %vm3554_vm1, %v3549_v11 }
 0x5ee   :  { %5263 = shalt.err (!%p5260_p12)
}
 0x5ef   :  { %s5264_s12 = scalar_lea.hbm %s6143_s13, 32 }
 0x5f0   :  { %p5265_p13 = scmp.ne.s32.totalorder %s6143_s13, %s5264_s12  ;;  %p5268_p0 = scmp.lt.u32.totalorder %s5264_s12, %s6143_s13 }
 0x5f2   :  { %p5270_p1 = pnand %p5268_p0, %p5265_p13 }
 0x5f4   :  { %5273 = shalt.err (!%p5270_p1)
}
 0x5f5   :  { %3565 = dma.vmem_to_hbm [thread:$0]  %s3563_s24, 32, %s6143_s13, [#allocation8]  }
 0x5f6   :  { %5276 = dma.done.wait [#allocation8], 32  }
 0x5f7   :  { %5277 = vsyncadd [#allocation8], 4294967264 }
 0x5f8   :  { %3569 = vsyncpa [#allocation7], 1 }
 0x5f9   :  { %3570 = vsyncpa [#allocation8], 1 }

</bundles_post_ra>
